<compile_context>
chip_gen: v7x
topology: tpu7x:2x2x1
jax: 0.10.0
libtpu: 0.0.40
codegen_flags: <defaults>
</compile_context>

<pallas_src>
import functools

import numpy as np
import jax
import jax.numpy as jnp
from jax import lax
from jax.experimental import pallas as pl
from jax.experimental.pallas import tpu as pltpu


# ---------------------------------------------------------------------------
# Pass 1: 3x3 conv (stride 1, zero pad 1) + per-image BN partial statistics.
# Grid: (N,) -- one image per step ("parallel").
# Layout: per image the C channel planes are flattened to (C, H*W) so the
# lane dim is H*W; conv taps are unaligned lane slices of a flat zero-padded
# scratch (handles the kh halo) masked by two lane masks (handles the kw halo).
# ---------------------------------------------------------------------------
def _conv_stats_kernel(x_ref, w_ref, ml_ref, mr_ref, conv_ref, stats_ref,
                       xpad_ref, *, W):
    """x_ref: (C, H*W) flat channel planes of one image.
    w_ref: (C_out, 9*C_in) weights, column = (kh*3+kw)*C_in + ci.
    ml_ref / mr_ref: (1, H*W) float masks (0 where w==0 / w==W-1).
    conv_ref: (C, H*W) conv output. stats_ref: (C, 2) = [sum, sum_of_sq].
    xpad_ref: VMEM (C, H*W + 2*W + 2) flat zero-padded scratch."""
    C, HW = x_ref.shape
    PAD = W + 1  # flat left/right zero halo covers the kh = +/-1 row overflow

    xpad_ref[...] = jnp.zeros(xpad_ref.shape, jnp.float32)
    xpad_ref[:, PAD:PAD + HW] = x_ref[...].astype(jnp.float32)

    mask_l = ml_ref[...]                                     # (1, HW)
    mask_r = mr_ref[...]                                     # (1, HW)

    acc = jnp.zeros((C, HW), jnp.float32)
    for kh in range(3):
        for kw in range(3):
            off = (kh - 1) * W + (kw - 1)
            start = PAD + off
            tap = xpad_ref[:, start:start + HW]              # (C_in, HW)
            if kw == 0:                                      # w-1 < 0 at w==0
                tap = tap * mask_l
            elif kw == 2:                                    # w+1 >= W at w==W-1
                tap = tap * mask_r
            base = (kh * 3 + kw) * C
            for ci in range(C):
                wcol = w_ref[:, base + ci:base + ci + 1]     # (C_out, 1)
                # (1, HW) * (C_out, 1) -> (C_out, HW) VPU multiply-add.
                acc = acc + tap[ci:ci + 1, :] * wcol

    conv_ref[...] = acc
    # Single-pass statistics (sum, sum of squares) per channel of this image.
    # NOTE: can lose precision if |mean| >> std of the conv output; the batch
    # variance is clamped >= 0 in the wrapper.
    stats_ref[:, 0:1] = jnp.sum(acc, axis=1, keepdims=True)
    stats_ref[:, 1:2] = jnp.sum(acc * acc, axis=1, keepdims=True)


# ---------------------------------------------------------------------------
# Pass 2: out = x + conv * scale + shift (folded BN affine + residual) on the
# flat (N*C, H*W) view; per-row (= per image-channel) scale/shift columns.
# ---------------------------------------------------------------------------
def _bn_residual_kernel(conv_ref, x_ref, scale_ref, shift_ref, o_ref):
    o_ref[...] = (x_ref[...] + conv_ref[...] * scale_ref[...]
                  + shift_ref[...]).astype(o_ref.dtype)


def _pick_row_tile(rows, lanes, budget_bytes=24 << 20):
    """Largest multiple-of-8 divisor of `rows` whose double-buffered working
    set (3 row-blocks x 2 buffers, f32) stays under budget; else all rows."""
    cap = max(8, budget_bytes // (6 * lanes * 4))
    best = None
    t = 8
    while t <= min(rows, cap):
        if rows % t == 0:
            best = t
        t += 8
    return best if best is not None else rows


def resnet_block_pallas(x_nchw, w_oihw, gamma, beta, eps=1e-5):
    """Matches ResnetBlock.forward in train mode:
       out = x + BatchNorm2d(Conv2d(x, 3x3, s=1, p=1, bias=False))."""
    N, C, H, W = x_nchw.shape
    HW = H * W

    # Free reshapes of the contiguous NCHW buffer (no transposes).
    x3 = x_nchw.reshape(N, C, HW).astype(jnp.float32)        # (N, C, H*W)
    # OIHW -> (C_out, kh, kw, ci) -> (C_out, 9*C_in); column order matches kernel.
    w2 = jnp.transpose(w_oihw, (0, 2, 3, 1)).reshape(C, 9 * C).astype(jnp.float32)

    # Lane masks for the kw = -1 / +1 column halo (trace-time constants).
    col = np.arange(HW, dtype=np.int32) % W
    mask_l = jnp.asarray((col != 0).astype(np.float32)).reshape(1, HW)
    mask_r = jnp.asarray((col != W - 1).astype(np.float32)).reshape(1, HW)

    kernel1 = functools.partial(_conv_stats_kernel, W=W)
    conv3, stats = pl.pallas_call(
        kernel1,
        out_shape=(jax.ShapeDtypeStruct((N, C, HW), jnp.float32),
                   jax.ShapeDtypeStruct((N, C, 2), jnp.float32)),
        grid_spec=pltpu.PrefetchScalarGridSpec(
            num_scalar_prefetch=0,
            grid=(N,),
            in_specs=[
                pl.BlockSpec((None, C, HW), lambda n: (n, 0, 0)),
                pl.BlockSpec((C, 9 * C), lambda n: (0, 0)),
                pl.BlockSpec((1, HW), lambda n: (0, 0)),
                pl.BlockSpec((1, HW), lambda n: (0, 0)),
            ],
            out_specs=[
                pl.BlockSpec((None, C, HW), lambda n: (n, 0, 0)),
                pl.BlockSpec((None, C, 2), lambda n: (n, 0, 0)),
            ],
            scratch_shapes=[
                pltpu.VMEM((C, HW + 2 * W + 2), jnp.float32),
            ]),
        compiler_params=pltpu.CompilerParams(
            dimension_semantics=("parallel",)),
    )(x3, w2, mask_l, mask_r)

    # Finalize BatchNorm statistics (tiny (N, C, 2) reduce) and fold the
    # affine: bn(y) = y*scale + shift with biased batch variance.
    cnt = jnp.float32(N * HW)
    sums = jnp.sum(stats[:, :, 0], axis=0)                   # (C,)
    sumsq = jnp.sum(stats[:, :, 1], axis=0)                  # (C,)
    mean = sums / cnt
    var = jnp.maximum(sumsq / cnt - mean * mean, 0.0)        # clamp >= 0
    scale = gamma.astype(jnp.float32) * lax.rsqrt(var + eps)
    shift = beta.astype(jnp.float32) - mean * scale

    rows = N * C
    conv2 = conv3.reshape(rows, HW)                          # free reshape
    x2 = x3.reshape(rows, HW)                                # free reshape
    scale_rows = jnp.tile(scale, (N,)).reshape(rows, 1)      # row = n*C + c
    shift_rows = jnp.tile(shift, (N,)).reshape(rows, 1)

    tile_rows = _pick_row_tile(rows, HW)
    out2 = pl.pallas_call(
        _bn_residual_kernel,
        out_shape=jax.ShapeDtypeStruct((rows, HW), jnp.float32),
        grid=(rows // tile_rows,),
        in_specs=[
            pl.BlockSpec((tile_rows, HW), lambda i: (i, 0)),
            pl.BlockSpec((tile_rows, HW), lambda i: (i, 0)),
            pl.BlockSpec((tile_rows, 1), lambda i: (i, 0)),
            pl.BlockSpec((tile_rows, 1), lambda i: (i, 0)),
        ],
        out_specs=pl.BlockSpec((tile_rows, HW), lambda i: (i, 0)),
        # conv2 is dead after this pass; write the result into its buffer.
        input_output_aliases={0: 0},
        compiler_params=pltpu.CompilerParams(
            dimension_semantics=("parallel",)),
    )(conv2, x2, scale_rows, shift_rows)

    return out2.reshape(N, C, H, W).astype(x_nchw.dtype)     # already NCHW


if __name__ == "__main__":
    key = jax.random.PRNGKey(0)
    k_x, k_w = jax.random.split(key)

    N, C, H, W = 2, 4, 16, 16                                # conv_dim = 4
    x = jax.random.normal(k_x, (N, C, H, W), dtype=jnp.float32)
    # Conv2d(conv_dim, conv_dim, 3, stride=1, padding=1, bias=False) weight
    w = jax.random.normal(k_w, (C, C, 3, 3), dtype=jnp.float32) * 0.1
    # BatchNorm2d(conv_dim) default init: gamma=1, beta=0
    gamma = jnp.ones((C,), jnp.float32)
    beta = jnp.zeros((C,), jnp.float32)

    out = jax.jit(resnet_block_pallas)(x, w, gamma, beta)
    jax.block_until_ready(out)

    # Pure-JAX reference: conv + training-mode (batch-stat) BN + residual.
    conv_ref = lax.conv_general_dilated(
        x, w, window_strides=(1, 1), padding=((1, 1), (1, 1)),
        dimension_numbers=("NCHW", "OIHW", "NCHW"))
    mean = jnp.mean(conv_ref, axis=(0, 2, 3), keepdims=True)
    var = jnp.mean((conv_ref - mean) ** 2, axis=(0, 2, 3), keepdims=True)
    bn_ref = (conv_ref - mean) * lax.rsqrt(var + 1e-5) \
        * gamma.reshape(1, C, 1, 1) + beta.reshape(1, C, 1, 1)
    ref = x + bn_ref
    assert jnp.allclose(out, ref, atol=2e-4, rtol=2e-4), \
        float(jnp.max(jnp.abs(out - ref)))

    print("KERNEL_OK")
</pallas_src>

<mosaic_0001>
module attributes {stable_mosaic.version = 11 : i64} {
  func.func @_conv_stats_kernel(%arg0: i32, %arg1: memref<1x4x256xf32, #tpu.memory_space<vmem>>, %arg2: memref<4x36xf32, #tpu.memory_space<vmem>>, %arg3: memref<1x256xf32, #tpu.memory_space<vmem>>, %arg4: memref<1x256xf32, #tpu.memory_space<vmem>>, %arg5: memref<1x4x256xf32, #tpu.memory_space<vmem>>, %arg6: memref<1x4x2xf32, #tpu.memory_space<vmem>>, %arg7: memref<4x290xf32, #tpu.memory_space<vmem>>) attributes {dimension_semantics = [#tpu.dimension_semantics<parallel>], iteration_bounds = array<i64: 2>, scalar_prefetch = 0 : i64, scratch_operands = 1 : i64, tpu.core_type = #tpu.core_type<tc>, window_params = [{transform_indices = @transform_0, window_bounds = array<i64: 1, 4, 256>}, {pipeline_mode = #tpu.pipeline_mode<synchronous>, transform_indices = @transform_1, window_bounds = array<i64: 4, 36>}, {pipeline_mode = #tpu.pipeline_mode<synchronous>, transform_indices = @transform_2, window_bounds = array<i64: 1, 256>}, {pipeline_mode = #tpu.pipeline_mode<synchronous>, transform_indices = @transform_3, window_bounds = array<i64: 1, 256>}, {transform_indices = @transform_4, window_bounds = array<i64: 1, 4, 256>}, {transform_indices = @transform_5, window_bounds = array<i64: 1, 4, 2>}]} {
    %cst = arith.constant 0.000000e+00 : f32
    %0 = vector.broadcast %cst : f32 to vector<4x290xf32>
    %c0 = arith.constant 0 : index
    %c0_0 = arith.constant 0 : index
    %1 = vector.load %arg7[%c0, %c0_0] : memref<4x290xf32, #tpu.memory_space<vmem>>, vector<4x290xf32>
    tpu.vector_store %arg7[%c0, %c0_0], %0 {strides = array<i32>} : memref<4x290xf32, #tpu.memory_space<vmem>>, vector<4x290xf32>,
    %c0_1 = arith.constant 0 : index
    %c0_2 = arith.constant 0 : index
    %c0_3 = arith.constant 0 : index
    %2 = vector.load %arg1[%c0_1, %c0_2, %c0_3] : memref<1x4x256xf32, #tpu.memory_space<vmem>>, vector<1x4x256xf32>
    %3 = vector.shape_cast %2 : vector<1x4x256xf32> to vector<4x256xf32>
    %c0_4 = arith.constant 0 : index
    %c17 = arith.constant 17 : index
    %4 = vector.load %arg7[%c0_4, %c17] : memref<4x290xf32, #tpu.memory_space<vmem>>, vector<4x256xf32>
    tpu.vector_store %arg7[%c0_4, %c17], %3 {strides = array<i32>} : memref<4x290xf32, #tpu.memory_space<vmem>>, vector<4x256xf32>,
    %c0_5 = arith.constant 0 : index
    %c0_6 = arith.constant 0 : index
    %5 = vector.load %arg3[%c0_5, %c0_6] : memref<1x256xf32, #tpu.memory_space<vmem>>, vector<1x256xf32>
    %c0_7 = arith.constant 0 : index
    %c0_8 = arith.constant 0 : index
    %6 = vector.load %arg4[%c0_7, %c0_8] : memref<1x256xf32, #tpu.memory_space<vmem>>, vector<1x256xf32>
    %cst_9 = arith.constant 0.000000e+00 : f32
    %7 = vector.broadcast %cst_9 : f32 to vector<4x256xf32>
    %c0_10 = arith.constant 0 : index
    %c0_11 = arith.constant 0 : index
    %8 = vector.load %arg7[%c0_10, %c0_11] : memref<4x290xf32, #tpu.memory_space<vmem>>, vector<4x256xf32>
    %9 = vector.broadcast %5 : vector<1x256xf32> to vector<4x256xf32>
    %10 = arith.mulf %8, %9 : vector<4x256xf32>
    %c0_12 = arith.constant 0 : index
    %c0_13 = arith.constant 0 : index
    %11 = vector.load %arg2[%c0_12, %c0_13] : memref<4x36xf32, #tpu.memory_space<vmem>>, vector<4x1xf32>
    %12 = vector.extract_strided_slice %10 {offsets = [0, 0], sizes = [1, 256], strides = [1, 1]} : vector<4x256xf32> to vector<1x256xf32>
    %13 = vector.broadcast %12 : vector<1x256xf32> to vector<4x256xf32>
    %14 = vector.broadcast %11 : vector<4x1xf32> to vector<4x256xf32>
    %15 = arith.mulf %13, %14 : vector<4x256xf32>
    %16 = arith.addf %7, %15 : vector<4x256xf32>
    %c0_14 = arith.constant 0 : index
    %c1 = arith.constant 1 : index
    %17 = vector.load %arg2[%c0_14, %c1] : memref<4x36xf32, #tpu.memory_space<vmem>>, vector<4x1xf32>
    %18 = vector.extract_strided_slice %10 {offsets = [1, 0], sizes = [1, 256], strides = [1, 1]} : vector<4x256xf32> to vector<1x256xf32>
    %19 = vector.broadcast %18 : vector<1x256xf32> to vector<4x256xf32>
    %20 = vector.broadcast %17 : vector<4x1xf32> to vector<4x256xf32>
    %21 = arith.mulf %19, %20 : vector<4x256xf32>
    %22 = arith.addf %16, %21 : vector<4x256xf32>
    %c0_15 = arith.constant 0 : index
    %c2 = arith.constant 2 : index
    %23 = vector.load %arg2[%c0_15, %c2] : memref<4x36xf32, #tpu.memory_space<vmem>>, vector<4x1xf32>
    %24 = vector.extract_strided_slice %10 {offsets = [2, 0], sizes = [1, 256], strides = [1, 1]} : vector<4x256xf32> to vector<1x256xf32>
    %25 = vector.broadcast %24 : vector<1x256xf32> to vector<4x256xf32>
    %26 = vector.broadcast %23 : vector<4x1xf32> to vector<4x256xf32>
    %27 = arith.mulf %25, %26 : vector<4x256xf32>
    %28 = arith.addf %22, %27 : vector<4x256xf32>
    %c0_16 = arith.constant 0 : index
    %c3 = arith.constant 3 : index
    %29 = vector.load %arg2[%c0_16, %c3] : memref<4x36xf32, #tpu.memory_space<vmem>>, vector<4x1xf32>
    %30 = vector.extract_strided_slice %10 {offsets = [3, 0], sizes = [1, 256], strides = [1, 1]} : vector<4x256xf32> to vector<1x256xf32>
    %31 = vector.broadcast %30 : vector<1x256xf32> to vector<4x256xf32>
    %32 = vector.broadcast %29 : vector<4x1xf32> to vector<4x256xf32>
    %33 = arith.mulf %31, %32 : vector<4x256xf32>
    %34 = arith.addf %28, %33 : vector<4x256xf32>
    %c0_17 = arith.constant 0 : index
    %c1_18 = arith.constant 1 : index
    %35 = vector.load %arg7[%c0_17, %c1_18] : memref<4x290xf32, #tpu.memory_space<vmem>>, vector<4x256xf32>
    %c0_19 = arith.constant 0 : index
    %c4 = arith.constant 4 : index
    %36 = vector.load %arg2[%c0_19, %c4] : memref<4x36xf32, #tpu.memory_space<vmem>>, vector<4x1xf32>
    %37 = vector.extract_strided_slice %35 {offsets = [0, 0], sizes = [1, 256], strides = [1, 1]} : vector<4x256xf32> to vector<1x256xf32>
    %38 = vector.broadcast %37 : vector<1x256xf32> to vector<4x256xf32>
    %39 = vector.broadcast %36 : vector<4x1xf32> to vector<4x256xf32>
    %40 = arith.mulf %38, %39 : vector<4x256xf32>
    %41 = arith.addf %34, %40 : vector<4x256xf32>
    %c0_20 = arith.constant 0 : index
    %c5 = arith.constant 5 : index
    %42 = vector.load %arg2[%c0_20, %c5] : memref<4x36xf32, #tpu.memory_space<vmem>>, vector<4x1xf32>
    %43 = vector.extract_strided_slice %35 {offsets = [1, 0], sizes = [1, 256], strides = [1, 1]} : vector<4x256xf32> to vector<1x256xf32>
    %44 = vector.broadcast %43 : vector<1x256xf32> to vector<4x256xf32>
    %45 = vector.broadcast %42 : vector<4x1xf32> to vector<4x256xf32>
    %46 = arith.mulf %44, %45 : vector<4x256xf32>
    %47 = arith.addf %41, %46 : vector<4x256xf32>
    %c0_21 = arith.constant 0 : index
    %c6 = arith.constant 6 : index
    %48 = vector.load %arg2[%c0_21, %c6] : memref<4x36xf32, #tpu.memory_space<vmem>>, vector<4x1xf32>
    %49 = vector.extract_strided_slice %35 {offsets = [2, 0], sizes = [1, 256], strides = [1, 1]} : vector<4x256xf32> to vector<1x256xf32>
    %50 = vector.broadcast %49 : vector<1x256xf32> to vector<4x256xf32>
    %51 = vector.broadcast %48 : vector<4x1xf32> to vector<4x256xf32>
    %52 = arith.mulf %50, %51 : vector<4x256xf32>
    %53 = arith.addf %47, %52 : vector<4x256xf32>
    %c0_22 = arith.constant 0 : index
    %c7 = arith.constant 7 : index
    %54 = vector.load %arg2[%c0_22, %c7] : memref<4x36xf32, #tpu.memory_space<vmem>>, vector<4x1xf32>
    %55 = vector.extract_strided_slice %35 {offsets = [3, 0], sizes = [1, 256], strides = [1, 1]} : vector<4x256xf32> to vector<1x256xf32>
    %56 = vector.broadcast %55 : vector<1x256xf32> to vector<4x256xf32>
    %57 = vector.broadcast %54 : vector<4x1xf32> to vector<4x256xf32>
    %58 = arith.mulf %56, %57 : vector<4x256xf32>
    %59 = arith.addf %53, %58 : vector<4x256xf32>
    %c0_23 = arith.constant 0 : index
    %c2_24 = arith.constant 2 : index
    %60 = vector.load %arg7[%c0_23, %c2_24] : memref<4x290xf32, #tpu.memory_space<vmem>>, vector<4x256xf32>
    %61 = vector.broadcast %6 : vector<1x256xf32> to vector<4x256xf32>
    %62 = arith.mulf %60, %61 : vector<4x256xf32>
    %c0_25 = arith.constant 0 : index
    %c8 = arith.constant 8 : index
    %63 = vector.load %arg2[%c0_25, %c8] : memref<4x36xf32, #tpu.memory_space<vmem>>, vector<4x1xf32>
    %64 = vector.extract_strided_slice %62 {offsets = [0, 0], sizes = [1, 256], strides = [1, 1]} : vector<4x256xf32> to vector<1x256xf32>
    %65 = vector.broadcast %64 : vector<1x256xf32> to vector<4x256xf32>
    %66 = vector.broadcast %63 : vector<4x1xf32> to vector<4x256xf32>
    %67 = arith.mulf %65, %66 : vector<4x256xf32>
    %68 = arith.addf %59, %67 : vector<4x256xf32>
    %c0_26 = arith.constant 0 : index
    %c9 = arith.constant 9 : index
    %69 = vector.load %arg2[%c0_26, %c9] : memref<4x36xf32, #tpu.memory_space<vmem>>, vector<4x1xf32>
    %70 = vector.extract_strided_slice %62 {offsets = [1, 0], sizes = [1, 256], strides = [1, 1]} : vector<4x256xf32> to vector<1x256xf32>
    %71 = vector.broadcast %70 : vector<1x256xf32> to vector<4x256xf32>
    %72 = vector.broadcast %69 : vector<4x1xf32> to vector<4x256xf32>
    %73 = arith.mulf %71, %72 : vector<4x256xf32>
    %74 = arith.addf %68, %73 : vector<4x256xf32>
    %c0_27 = arith.constant 0 : index
    %c10 = arith.constant 10 : index
    %75 = vector.load %arg2[%c0_27, %c10] : memref<4x36xf32, #tpu.memory_space<vmem>>, vector<4x1xf32>
    %76 = vector.extract_strided_slice %62 {offsets = [2, 0], sizes = [1, 256], strides = [1, 1]} : vector<4x256xf32> to vector<1x256xf32>
    %77 = vector.broadcast %76 : vector<1x256xf32> to vector<4x256xf32>
    %78 = vector.broadcast %75 : vector<4x1xf32> to vector<4x256xf32>
    %79 = arith.mulf %77, %78 : vector<4x256xf32>
    %80 = arith.addf %74, %79 : vector<4x256xf32>
    %c0_28 = arith.constant 0 : index
    %c11 = arith.constant 11 : index
    %81 = vector.load %arg2[%c0_28, %c11] : memref<4x36xf32, #tpu.memory_space<vmem>>, vector<4x1xf32>
    %82 = vector.extract_strided_slice %62 {offsets = [3, 0], sizes = [1, 256], strides = [1, 1]} : vector<4x256xf32> to vector<1x256xf32>
    %83 = vector.broadcast %82 : vector<1x256xf32> to vector<4x256xf32>
    %84 = vector.broadcast %81 : vector<4x1xf32> to vector<4x256xf32>
    %85 = arith.mulf %83, %84 : vector<4x256xf32>
    %86 = arith.addf %80, %85 : vector<4x256xf32>
    %c0_29 = arith.constant 0 : index
    %c16 = arith.constant 16 : index
    %87 = vector.load %arg7[%c0_29, %c16] : memref<4x290xf32, #tpu.memory_space<vmem>>, vector<4x256xf32>
    %88 = vector.broadcast %5 : vector<1x256xf32> to vector<4x256xf32>
    %89 = arith.mulf %87, %88 : vector<4x256xf32>
    %c0_30 = arith.constant 0 : index
    %c12 = arith.constant 12 : index
    %90 = vector.load %arg2[%c0_30, %c12] : memref<4x36xf32, #tpu.memory_space<vmem>>, vector<4x1xf32>
    %91 = vector.extract_strided_slice %89 {offsets = [0, 0], sizes = [1, 256], strides = [1, 1]} : vector<4x256xf32> to vector<1x256xf32>
    %92 = vector.broadcast %91 : vector<1x256xf32> to vector<4x256xf32>
    %93 = vector.broadcast %90 : vector<4x1xf32> to vector<4x256xf32>
    %94 = arith.mulf %92, %93 : vector<4x256xf32>
    %95 = arith.addf %86, %94 : vector<4x256xf32>
    %c0_31 = arith.constant 0 : index
    %c13 = arith.constant 13 : index
    %96 = vector.load %arg2[%c0_31, %c13] : memref<4x36xf32, #tpu.memory_space<vmem>>, vector<4x1xf32>
    %97 = vector.extract_strided_slice %89 {offsets = [1, 0], sizes = [1, 256], strides = [1, 1]} : vector<4x256xf32> to vector<1x256xf32>
    %98 = vector.broadcast %97 : vector<1x256xf32> to vector<4x256xf32>
    %99 = vector.broadcast %96 : vector<4x1xf32> to vector<4x256xf32>
    %100 = arith.mulf %98, %99 : vector<4x256xf32>
    %101 = arith.addf %95, %100 : vector<4x256xf32>
    %c0_32 = arith.constant 0 : index
    %c14 = arith.constant 14 : index
    %102 = vector.load %arg2[%c0_32, %c14] : memref<4x36xf32, #tpu.memory_space<vmem>>, vector<4x1xf32>
    %103 = vector.extract_strided_slice %89 {offsets = [2, 0], sizes = [1, 256], strides = [1, 1]} : vector<4x256xf32> to vector<1x256xf32>
    %104 = vector.broadcast %103 : vector<1x256xf32> to vector<4x256xf32>
    %105 = vector.broadcast %102 : vector<4x1xf32> to vector<4x256xf32>
    %106 = arith.mulf %104, %105 : vector<4x256xf32>
    %107 = arith.addf %101, %106 : vector<4x256xf32>
    %c0_33 = arith.constant 0 : index
    %c15 = arith.constant 15 : index
    %108 = vector.load %arg2[%c0_33, %c15] : memref<4x36xf32, #tpu.memory_space<vmem>>, vector<4x1xf32>
    %109 = vector.extract_strided_slice %89 {offsets = [3, 0], sizes = [1, 256], strides = [1, 1]} : vector<4x256xf32> to vector<1x256xf32>
    %110 = vector.broadcast %109 : vector<1x256xf32> to vector<4x256xf32>
    %111 = vector.broadcast %108 : vector<4x1xf32> to vector<4x256xf32>
    %112 = arith.mulf %110, %111 : vector<4x256xf32>
    %113 = arith.addf %107, %112 : vector<4x256xf32>
    %c0_34 = arith.constant 0 : index
    %c17_35 = arith.constant 17 : index
    %114 = vector.load %arg7[%c0_34, %c17_35] : memref<4x290xf32, #tpu.memory_space<vmem>>, vector<4x256xf32>
    %c0_36 = arith.constant 0 : index
    %c16_37 = arith.constant 16 : index
    %115 = vector.load %arg2[%c0_36, %c16_37] : memref<4x36xf32, #tpu.memory_space<vmem>>, vector<4x1xf32>
    %116 = vector.extract_strided_slice %114 {offsets = [0, 0], sizes = [1, 256], strides = [1, 1]} : vector<4x256xf32> to vector<1x256xf32>
    %117 = vector.broadcast %116 : vector<1x256xf32> to vector<4x256xf32>
    %118 = vector.broadcast %115 : vector<4x1xf32> to vector<4x256xf32>
    %119 = arith.mulf %117, %118 : vector<4x256xf32>
    %120 = arith.addf %113, %119 : vector<4x256xf32>
    %c0_38 = arith.constant 0 : index
    %c17_39 = arith.constant 17 : index
    %121 = vector.load %arg2[%c0_38, %c17_39] : memref<4x36xf32, #tpu.memory_space<vmem>>, vector<4x1xf32>
    %122 = vector.extract_strided_slice %114 {offsets = [1, 0], sizes = [1, 256], strides = [1, 1]} : vector<4x256xf32> to vector<1x256xf32>
    %123 = vector.broadcast %122 : vector<1x256xf32> to vector<4x256xf32>
    %124 = vector.broadcast %121 : vector<4x1xf32> to vector<4x256xf32>
    %125 = arith.mulf %123, %124 : vector<4x256xf32>
    %126 = arith.addf %120, %125 : vector<4x256xf32>
    %c0_40 = arith.constant 0 : index
    %c18 = arith.constant 18 : index
    %127 = vector.load %arg2[%c0_40, %c18] : memref<4x36xf32, #tpu.memory_space<vmem>>, vector<4x1xf32>
    %128 = vector.extract_strided_slice %114 {offsets = [2, 0], sizes = [1, 256], strides = [1, 1]} : vector<4x256xf32> to vector<1x256xf32>
    %129 = vector.broadcast %128 : vector<1x256xf32> to vector<4x256xf32>
    %130 = vector.broadcast %127 : vector<4x1xf32> to vector<4x256xf32>
    %131 = arith.mulf %129, %130 : vector<4x256xf32>
    %132 = arith.addf %126, %131 : vector<4x256xf32>
    %c0_41 = arith.constant 0 : index
    %c19 = arith.constant 19 : index
    %133 = vector.load %arg2[%c0_41, %c19] : memref<4x36xf32, #tpu.memory_space<vmem>>, vector<4x1xf32>
    %134 = vector.extract_strided_slice %114 {offsets = [3, 0], sizes = [1, 256], strides = [1, 1]} : vector<4x256xf32> to vector<1x256xf32>
    %135 = vector.broadcast %134 : vector<1x256xf32> to vector<4x256xf32>
    %136 = vector.broadcast %133 : vector<4x1xf32> to vector<4x256xf32>
    %137 = arith.mulf %135, %136 : vector<4x256xf32>
    %138 = arith.addf %132, %137 : vector<4x256xf32>
    %c0_42 = arith.constant 0 : index
    %c18_43 = arith.constant 18 : index
    %139 = vector.load %arg7[%c0_42, %c18_43] : memref<4x290xf32, #tpu.memory_space<vmem>>, vector<4x256xf32>
    %140 = vector.broadcast %6 : vector<1x256xf32> to vector<4x256xf32>
    %141 = arith.mulf %139, %140 : vector<4x256xf32>
    %c0_44 = arith.constant 0 : index
    %c20 = arith.constant 20 : index
    %142 = vector.load %arg2[%c0_44, %c20] : memref<4x36xf32, #tpu.memory_space<vmem>>, vector<4x1xf32>
    %143 = vector.extract_strided_slice %141 {offsets = [0, 0], sizes = [1, 256], strides = [1, 1]} : vector<4x256xf32> to vector<1x256xf32>
    %144 = vector.broadcast %143 : vector<1x256xf32> to vector<4x256xf32>
    %145 = vector.broadcast %142 : vector<4x1xf32> to vector<4x256xf32>
    %146 = arith.mulf %144, %145 : vector<4x256xf32>
    %147 = arith.addf %138, %146 : vector<4x256xf32>
    %c0_45 = arith.constant 0 : index
    %c21 = arith.constant 21 : index
    %148 = vector.load %arg2[%c0_45, %c21] : memref<4x36xf32, #tpu.memory_space<vmem>>, vector<4x1xf32>
    %149 = vector.extract_strided_slice %141 {offsets = [1, 0], sizes = [1, 256], strides = [1, 1]} : vector<4x256xf32> to vector<1x256xf32>
    %150 = vector.broadcast %149 : vector<1x256xf32> to vector<4x256xf32>
    %151 = vector.broadcast %148 : vector<4x1xf32> to vector<4x256xf32>
    %152 = arith.mulf %150, %151 : vector<4x256xf32>
    %153 = arith.addf %147, %152 : vector<4x256xf32>
    %c0_46 = arith.constant 0 : index
    %c22 = arith.constant 22 : index
    %154 = vector.load %arg2[%c0_46, %c22] : memref<4x36xf32, #tpu.memory_space<vmem>>, vector<4x1xf32>
    %155 = vector.extract_strided_slice %141 {offsets = [2, 0], sizes = [1, 256], strides = [1, 1]} : vector<4x256xf32> to vector<1x256xf32>
    %156 = vector.broadcast %155 : vector<1x256xf32> to vector<4x256xf32>
    %157 = vector.broadcast %154 : vector<4x1xf32> to vector<4x256xf32>
    %158 = arith.mulf %156, %157 : vector<4x256xf32>
    %159 = arith.addf %153, %158 : vector<4x256xf32>
    %c0_47 = arith.constant 0 : index
    %c23 = arith.constant 23 : index
    %160 = vector.load %arg2[%c0_47, %c23] : memref<4x36xf32, #tpu.memory_space<vmem>>, vector<4x1xf32>
    %161 = vector.extract_strided_slice %141 {offsets = [3, 0], sizes = [1, 256], strides = [1, 1]} : vector<4x256xf32> to vector<1x256xf32>
    %162 = vector.broadcast %161 : vector<1x256xf32> to vector<4x256xf32>
    %163 = vector.broadcast %160 : vector<4x1xf32> to vector<4x256xf32>
    %164 = arith.mulf %162, %163 : vector<4x256xf32>
    %165 = arith.addf %159, %164 : vector<4x256xf32>
    %c0_48 = arith.constant 0 : index
    %c32 = arith.constant 32 : index
    %166 = vector.load %arg7[%c0_48, %c32] : memref<4x290xf32, #tpu.memory_space<vmem>>, vector<4x256xf32>
    %167 = vector.broadcast %5 : vector<1x256xf32> to vector<4x256xf32>
    %168 = arith.mulf %166, %167 : vector<4x256xf32>
    %c0_49 = arith.constant 0 : index
    %c24 = arith.constant 24 : index
    %169 = vector.load %arg2[%c0_49, %c24] : memref<4x36xf32, #tpu.memory_space<vmem>>, vector<4x1xf32>
    %170 = vector.extract_strided_slice %168 {offsets = [0, 0], sizes = [1, 256], strides = [1, 1]} : vector<4x256xf32> to vector<1x256xf32>
    %171 = vector.broadcast %170 : vector<1x256xf32> to vector<4x256xf32>
    %172 = vector.broadcast %169 : vector<4x1xf32> to vector<4x256xf32>
    %173 = arith.mulf %171, %172 : vector<4x256xf32>
    %174 = arith.addf %165, %173 : vector<4x256xf32>
    %c0_50 = arith.constant 0 : index
    %c25 = arith.constant 25 : index
    %175 = vector.load %arg2[%c0_50, %c25] : memref<4x36xf32, #tpu.memory_space<vmem>>, vector<4x1xf32>
    %176 = vector.extract_strided_slice %168 {offsets = [1, 0], sizes = [1, 256], strides = [1, 1]} : vector<4x256xf32> to vector<1x256xf32>
    %177 = vector.broadcast %176 : vector<1x256xf32> to vector<4x256xf32>
    %178 = vector.broadcast %175 : vector<4x1xf32> to vector<4x256xf32>
    %179 = arith.mulf %177, %178 : vector<4x256xf32>
    %180 = arith.addf %174, %179 : vector<4x256xf32>
    %c0_51 = arith.constant 0 : index
    %c26 = arith.constant 26 : index
    %181 = vector.load %arg2[%c0_51, %c26] : memref<4x36xf32, #tpu.memory_space<vmem>>, vector<4x1xf32>
    %182 = vector.extract_strided_slice %168 {offsets = [2, 0], sizes = [1, 256], strides = [1, 1]} : vector<4x256xf32> to vector<1x256xf32>
    %183 = vector.broadcast %182 : vector<1x256xf32> to vector<4x256xf32>
    %184 = vector.broadcast %181 : vector<4x1xf32> to vector<4x256xf32>
    %185 = arith.mulf %183, %184 : vector<4x256xf32>
    %186 = arith.addf %180, %185 : vector<4x256xf32>
    %c0_52 = arith.constant 0 : index
    %c27 = arith.constant 27 : index
    %187 = vector.load %arg2[%c0_52, %c27] : memref<4x36xf32, #tpu.memory_space<vmem>>, vector<4x1xf32>
    %188 = vector.extract_strided_slice %168 {offsets = [3, 0], sizes = [1, 256], strides = [1, 1]} : vector<4x256xf32> to vector<1x256xf32>
    %189 = vector.broadcast %188 : vector<1x256xf32> to vector<4x256xf32>
    %190 = vector.broadcast %187 : vector<4x1xf32> to vector<4x256xf32>
    %191 = arith.mulf %189, %190 : vector<4x256xf32>
    %192 = arith.addf %186, %191 : vector<4x256xf32>
    %c0_53 = arith.constant 0 : index
    %c33 = arith.constant 33 : index
    %193 = vector.load %arg7[%c0_53, %c33] : memref<4x290xf32, #tpu.memory_space<vmem>>, vector<4x256xf32>
    %c0_54 = arith.constant 0 : index
    %c28 = arith.constant 28 : index
    %194 = vector.load %arg2[%c0_54, %c28] : memref<4x36xf32, #tpu.memory_space<vmem>>, vector<4x1xf32>
    %195 = vector.extract_strided_slice %193 {offsets = [0, 0], sizes = [1, 256], strides = [1, 1]} : vector<4x256xf32> to vector<1x256xf32>
    %196 = vector.broadcast %195 : vector<1x256xf32> to vector<4x256xf32>
    %197 = vector.broadcast %194 : vector<4x1xf32> to vector<4x256xf32>
    %198 = arith.mulf %196, %197 : vector<4x256xf32>
    %199 = arith.addf %192, %198 : vector<4x256xf32>
    %c0_55 = arith.constant 0 : index
    %c29 = arith.constant 29 : index
    %200 = vector.load %arg2[%c0_55, %c29] : memref<4x36xf32, #tpu.memory_space<vmem>>, vector<4x1xf32>
    %201 = vector.extract_strided_slice %193 {offsets = [1, 0], sizes = [1, 256], strides = [1, 1]} : vector<4x256xf32> to vector<1x256xf32>
    %202 = vector.broadcast %201 : vector<1x256xf32> to vector<4x256xf32>
    %203 = vector.broadcast %200 : vector<4x1xf32> to vector<4x256xf32>
    %204 = arith.mulf %202, %203 : vector<4x256xf32>
    %205 = arith.addf %199, %204 : vector<4x256xf32>
    %c0_56 = arith.constant 0 : index
    %c30 = arith.constant 30 : index
    %206 = vector.load %arg2[%c0_56, %c30] : memref<4x36xf32, #tpu.memory_space<vmem>>, vector<4x1xf32>
    %207 = vector.extract_strided_slice %193 {offsets = [2, 0], sizes = [1, 256], strides = [1, 1]} : vector<4x256xf32> to vector<1x256xf32>
    %208 = vector.broadcast %207 : vector<1x256xf32> to vector<4x256xf32>
    %209 = vector.broadcast %206 : vector<4x1xf32> to vector<4x256xf32>
    %210 = arith.mulf %208, %209 : vector<4x256xf32>
    %211 = arith.addf %205, %210 : vector<4x256xf32>
    %c0_57 = arith.constant 0 : index
    %c31 = arith.constant 31 : index
    %212 = vector.load %arg2[%c0_57, %c31] : memref<4x36xf32, #tpu.memory_space<vmem>>, vector<4x1xf32>
    %213 = vector.extract_strided_slice %193 {offsets = [3, 0], sizes = [1, 256], strides = [1, 1]} : vector<4x256xf32> to vector<1x256xf32>
    %214 = vector.broadcast %213 : vector<1x256xf32> to vector<4x256xf32>
    %215 = vector.broadcast %212 : vector<4x1xf32> to vector<4x256xf32>
    %216 = arith.mulf %214, %215 : vector<4x256xf32>
    %217 = arith.addf %211, %216 : vector<4x256xf32>
    %c0_58 = arith.constant 0 : index
    %c34 = arith.constant 34 : index
    %218 = vector.load %arg7[%c0_58, %c34] : memref<4x290xf32, #tpu.memory_space<vmem>>, vector<4x256xf32>
    %219 = vector.broadcast %6 : vector<1x256xf32> to vector<4x256xf32>
    %220 = arith.mulf %218, %219 : vector<4x256xf32>
    %c0_59 = arith.constant 0 : index
    %c32_60 = arith.constant 32 : index
    %221 = vector.load %arg2[%c0_59, %c32_60] : memref<4x36xf32, #tpu.memory_space<vmem>>, vector<4x1xf32>
    %222 = vector.extract_strided_slice %220 {offsets = [0, 0], sizes = [1, 256], strides = [1, 1]} : vector<4x256xf32> to vector<1x256xf32>
    %223 = vector.broadcast %222 : vector<1x256xf32> to vector<4x256xf32>
    %224 = vector.broadcast %221 : vector<4x1xf32> to vector<4x256xf32>
    %225 = arith.mulf %223, %224 : vector<4x256xf32>
    %226 = arith.addf %217, %225 : vector<4x256xf32>
    %c0_61 = arith.constant 0 : index
    %c33_62 = arith.constant 33 : index
    %227 = vector.load %arg2[%c0_61, %c33_62] : memref<4x36xf32, #tpu.memory_space<vmem>>, vector<4x1xf32>
    %228 = vector.extract_strided_slice %220 {offsets = [1, 0], sizes = [1, 256], strides = [1, 1]} : vector<4x256xf32> to vector<1x256xf32>
    %229 = vector.broadcast %228 : vector<1x256xf32> to vector<4x256xf32>
    %230 = vector.broadcast %227 : vector<4x1xf32> to vector<4x256xf32>
    %231 = arith.mulf %229, %230 : vector<4x256xf32>
    %232 = arith.addf %226, %231 : vector<4x256xf32>
    %c0_63 = arith.constant 0 : index
    %c34_64 = arith.constant 34 : index
    %233 = vector.load %arg2[%c0_63, %c34_64] : memref<4x36xf32, #tpu.memory_space<vmem>>, vector<4x1xf32>
    %234 = vector.extract_strided_slice %220 {offsets = [2, 0], sizes = [1, 256], strides = [1, 1]} : vector<4x256xf32> to vector<1x256xf32>
    %235 = vector.broadcast %234 : vector<1x256xf32> to vector<4x256xf32>
    %236 = vector.broadcast %233 : vector<4x1xf32> to vector<4x256xf32>
    %237 = arith.mulf %235, %236 : vector<4x256xf32>
    %238 = arith.addf %232, %237 : vector<4x256xf32>
    %c0_65 = arith.constant 0 : index
    %c35 = arith.constant 35 : index
    %239 = vector.load %arg2[%c0_65, %c35] : memref<4x36xf32, #tpu.memory_space<vmem>>, vector<4x1xf32>
    %240 = vector.extract_strided_slice %220 {offsets = [3, 0], sizes = [1, 256], strides = [1, 1]} : vector<4x256xf32> to vector<1x256xf32>
    %241 = vector.broadcast %240 : vector<1x256xf32> to vector<4x256xf32>
    %242 = vector.broadcast %239 : vector<4x1xf32> to vector<4x256xf32>
    %243 = arith.mulf %241, %242 : vector<4x256xf32>
    %244 = arith.addf %238, %243 : vector<4x256xf32>
    %c0_66 = arith.constant 0 : index
    %c0_67 = arith.constant 0 : index
    %c0_68 = arith.constant 0 : index
    %245 = vector.load %arg5[%c0_66, %c0_67, %c0_68] : memref<1x4x256xf32, #tpu.memory_space<vmem>>, vector<1x4x256xf32>
    %246 = vector.shape_cast %245 : vector<1x4x256xf32> to vector<4x256xf32>
    %247 = vector.shape_cast %244 : vector<4x256xf32> to vector<1x4x256xf32>
    tpu.vector_store %arg5[%c0_66, %c0_67, %c0_68], %247 {strides = array<i32>} : memref<1x4x256xf32, #tpu.memory_space<vmem>>, vector<1x4x256xf32>,
    %cst_69 = arith.constant dense<0.000000e+00> : vector<4xf32>
    %248 = vector.multi_reduction <add>, %244, %cst_69 [1] : vector<4x256xf32> to vector<4xf32>
    %249 = vector.shape_cast %248 : vector<4xf32> to vector<4x1xf32>
    %c0_70 = arith.constant 0 : index
    %c0_71 = arith.constant 0 : index
    %c0_72 = arith.constant 0 : index
    %250 = vector.load %arg6[%c0_70, %c0_71, %c0_72] : memref<1x4x2xf32, #tpu.memory_space<vmem>>, vector<1x4x1xf32>
    %251 = vector.shape_cast %250 : vector<1x4x1xf32> to vector<4x1xf32>
    %252 = vector.shape_cast %249 : vector<4x1xf32> to vector<1x4x1xf32>
    tpu.vector_store %arg6[%c0_70, %c0_71, %c0_72], %252 {strides = array<i32>} : memref<1x4x2xf32, #tpu.memory_space<vmem>>, vector<1x4x1xf32>,
    %253 = arith.mulf %244, %244 : vector<4x256xf32>
    %cst_73 = arith.constant dense<0.000000e+00> : vector<4xf32>
    %254 = vector.multi_reduction <add>, %253, %cst_73 [1] : vector<4x256xf32> to vector<4xf32>
    %255 = vector.shape_cast %254 : vector<4xf32> to vector<4x1xf32>
    %c0_74 = arith.constant 0 : index
    %c0_75 = arith.constant 0 : index
    %c1_76 = arith.constant 1 : index
    %256 = vector.load %arg6[%c0_74, %c0_75, %c1_76] : memref<1x4x2xf32, #tpu.memory_space<vmem>>, vector<1x4x1xf32>
    %257 = vector.shape_cast %256 : vector<1x4x1xf32> to vector<4x1xf32>
    %258 = vector.shape_cast %255 : vector<4x1xf32> to vector<1x4x1xf32>
    tpu.vector_store %arg6[%c0_74, %c0_75, %c1_76], %258 {strides = array<i32>} : memref<1x4x2xf32, #tpu.memory_space<vmem>>, vector<1x4x1xf32>,
    return
  }
  func.func @transform_0(%arg0: i32) -> (i32, i32, i32) {
    %c0_i32 = arith.constant 0 : i32
    %c0_i32_0 = arith.constant 0 : i32
    %c0_i32_1 = arith.constant 0 : i32
    return %arg0, %c0_i32, %c0_i32_0 : i32, i32, i32
  }
  func.func @transform_1(%arg0: i32) -> (i32, i32) {
    %c0_i32 = arith.constant 0 : i32
    %c0_i32_0 = arith.constant 0 : i32
    %c0_i32_1 = arith.constant 0 : i32
    return %c0_i32, %c0_i32_0 : i32, i32
  }
  func.func @transform_2(%arg0: i32) -> (i32, i32) {
    %c0_i32 = arith.constant 0 : i32
    %c0_i32_0 = arith.constant 0 : i32
    %c0_i32_1 = arith.constant 0 : i32
    return %c0_i32, %c0_i32_0 : i32, i32
  }
  func.func @transform_3(%arg0: i32) -> (i32, i32) {
    %c0_i32 = arith.constant 0 : i32
    %c0_i32_0 = arith.constant 0 : i32
    %c0_i32_1 = arith.constant 0 : i32
    return %c0_i32, %c0_i32_0 : i32, i32
  }
  func.func @transform_4(%arg0: i32) -> (i32, i32, i32) {
    %c0_i32 = arith.constant 0 : i32
    %c0_i32_0 = arith.constant 0 : i32
    %c0_i32_1 = arith.constant 0 : i32
    return %arg0, %c0_i32, %c0_i32_0 : i32, i32, i32
  }
  func.func @transform_5(%arg0: i32) -> (i32, i32, i32) {
    %c0_i32 = arith.constant 0 : i32
    %c0_i32_0 = arith.constant 0 : i32
    %c0_i32_1 = arith.constant 0 : i32
    return %arg0, %c0_i32, %c0_i32_0 : i32, i32, i32
  }
}

module attributes {stable_mosaic.version = 11 : i64} {
  func.func @_bn_residual_kernel(%arg0: i32, %arg1: memref<8x256xf32, #tpu.memory_space<vmem>>, %arg2: memref<8x256xf32, #tpu.memory_space<vmem>>, %arg3: memref<8x1xf32, #tpu.memory_space<vmem>>, %arg4: memref<8x1xf32, #tpu.memory_space<vmem>>, %arg5: memref<8x256xf32, #tpu.memory_space<vmem>>) attributes {dimension_semantics = [#tpu.dimension_semantics<parallel>], iteration_bounds = array<i64: 1>, scalar_prefetch = 0 : i64, scratch_operands = 0 : i64, tpu.core_type = #tpu.core_type<tc>, window_params = [{transform_indices = @transform_0, window_bounds = array<i64: 8, 256>}, {transform_indices = @transform_1, window_bounds = array<i64: 8, 256>}, {transform_indices = @transform_2, window_bounds = array<i64: 8, 1>}, {transform_indices = @transform_3, window_bounds = array<i64: 8, 1>}, {transform_indices = @transform_4, window_bounds = array<i64: 8, 256>}]} {
    %c0 = arith.constant 0 : index
    %c0_0 = arith.constant 0 : index
    %0 = vector.load %arg2[%c0, %c0_0] : memref<8x256xf32, #tpu.memory_space<vmem>>, vector<8x256xf32>
    %c0_1 = arith.constant 0 : index
    %c0_2 = arith.constant 0 : index
    %1 = vector.load %arg1[%c0_1, %c0_2] : memref<8x256xf32, #tpu.memory_space<vmem>>, vector<8x256xf32>
    %c0_3 = arith.constant 0 : index
    %c0_4 = arith.constant 0 : index
    %2 = vector.load %arg3[%c0_3, %c0_4] : memref<8x1xf32, #tpu.memory_space<vmem>>, vector<8x1xf32>
    %3 = vector.broadcast %2 : vector<8x1xf32> to vector<8x256xf32>
    %4 = arith.mulf %1, %3 : vector<8x256xf32>
    %5 = arith.addf %0, %4 : vector<8x256xf32>
    %c0_5 = arith.constant 0 : index
    %c0_6 = arith.constant 0 : index
    %6 = vector.load %arg4[%c0_5, %c0_6] : memref<8x1xf32, #tpu.memory_space<vmem>>, vector<8x1xf32>
    %7 = vector.broadcast %6 : vector<8x1xf32> to vector<8x256xf32>
    %8 = arith.addf %5, %7 : vector<8x256xf32>
    %c0_7 = arith.constant 0 : index
    %c0_8 = arith.constant 0 : index
    %9 = vector.load %arg5[%c0_7, %c0_8] : memref<8x256xf32, #tpu.memory_space<vmem>>, vector<8x256xf32>
    tpu.vector_store %arg5[%c0_7, %c0_8], %8 {strides = array<i32>} : memref<8x256xf32, #tpu.memory_space<vmem>>, vector<8x256xf32>,
    return
  }
  func.func @transform_0(%arg0: i32) -> (i32, i32) {
    %c0_i32 = arith.constant 0 : i32
    %c0_i32_0 = arith.constant 0 : i32
    return %arg0, %c0_i32 : i32, i32
  }
  func.func @transform_1(%arg0: i32) -> (i32, i32) {
    %c0_i32 = arith.constant 0 : i32
    %c0_i32_0 = arith.constant 0 : i32
    return %arg0, %c0_i32 : i32, i32
  }
  func.func @transform_2(%arg0: i32) -> (i32, i32) {
    %c0_i32 = arith.constant 0 : i32
    %c0_i32_0 = arith.constant 0 : i32
    return %arg0, %c0_i32 : i32, i32
  }
  func.func @transform_3(%arg0: i32) -> (i32, i32) {
    %c0_i32 = arith.constant 0 : i32
    %c0_i32_0 = arith.constant 0 : i32
    return %arg0, %c0_i32 : i32, i32
  }
  func.func @transform_4(%arg0: i32) -> (i32, i32) {
    %c0_i32 = arith.constant 0 : i32
    %c0_i32_0 = arith.constant 0 : i32
    return %arg0, %c0_i32 : i32, i32
  }
}

</mosaic_0001>

<bundles_post_ra>
// kernel: tile.18
= control target key start
LH: loop header
LB: loop body
LE: loop exit
PB: predicated region body
PF: predicated region fallthrough
CT: control target
= control target key end

     0   :  { %s22_s0 = inlined_call_operand.vmem [shape: f32[4], index: 0, kind: input, shape index: {}]   ;;  %s23_s1 = inlined_call_operand.vmem [shape: f32[2,4], index: 1, kind: output, shape index: {}]  }
   0x1   :  { %v4_v0 = vld [vmem:[%s22_s0] ss:$0 sm:$0xff] }
   0x2   :  { %5 = vst [vmem:[%s23_s1] sm:$0x3] %v4_v0 }

// kernel: tile.0
= control target key start
LH: loop header
LB: loop body
LE: loop exit
PB: predicated region body
PF: predicated region fallthrough
CT: control target
= control target key end

     0   :  { %s34_s8 = smov 125   ;;  %vm7_vm0 = vcmask 7168   ;;  %s35_s11 = smov 126   ;;  %s61_s0 = inlined_call_operand.vmem [shape: f32[2,4], index: 0, kind: input, shape index: {}]   ;;  %s62_s1 = inlined_call_operand.vmem [shape: f32[8,1], index: 1, kind: output, shape index: {}]  }
   0x1   :  { %v4_v0 = vld [vmem:[%s61_s0] sm:$0x3]  ;;  %s33_s0 = smov 127  }
   0x2   :  { %5 = vst [vmem:[#allocation0] sm:$0x3] %v4_v0 }
   0x9   :  { %v9_v1 = vld [vmem:[#allocation0] sm:$0x3]  }
   0xa   :  { %v21_v2 = vld [vmem:[#allocation0] sm:$0x3]   ;;  %10 = vrot.lane.b32.xlu0 %v9_v1, %s33_s0 }
   0xb   :  { %22 = vrot.lane.b32.xlu1 %v21_v2, %s34_s8  ;;  %v6_v3 = vld [vmem:[#allocation0] sm:$0x3]  }
   0xc   :  { %v15_v4 = vld [vmem:[#allocation0] sm:$0x3]   ;;  %8 = vst.msk [vmem:[%s62_s1] ss:$4 sm:$0x3] %vm7_vm0, %v6_v3  }
   0xe   :  { %16 = vrot.lane.b32.xlu0 %v15_v4, %s35_s11 }
  0x7c   :  { %v11_v5 = vpop.permute.xlu0 %10  }
  0x7d   :  { %v23_v6 = vpop.permute.xlu1 %22   ;;  %27 = vst.msk [vmem:[%s62_s1 + $0x1] ss:$4 sm:$0x3] %vm7_vm0, %v11_v5  }
  0x7e   :  { %29 = vst.msk [vmem:[%s62_s1 + $0x3] ss:$4 sm:$0x3] %vm7_vm0, %v23_v6  }
  0x80   :  { %v17_v7 = vpop.permute.xlu0 %16  }
  0x81   :  { %28 = vst.msk [vmem:[%s62_s1 + $0x2] ss:$4 sm:$0x3] %vm7_vm0, %v17_v7  }

// kernel: resnet_block_pallas.3
= control target key start
LH: loop header
LB: loop body
LE: loop exit
PB: predicated region body
PF: predicated region fallthrough
CT: control target
= control target key end

     0   :  { %v47_v0 = vmov 0   ;;  %s97_s2 = inlined_call_operand.vmem [shape: f32[8,1], index: 2, kind: input, shape index: {}]   ;;  %s98_s3 = inlined_call_operand.vmem [shape: f32[8,1], index: 3, kind: input, shape index: {}]   ;;  %s99_s0 = inlined_call_operand.vmem [shape: f32[8,256], index: 0, kind: input, shape index: {}, may-alias: {0,4}]   ;;  %s100_s1 = inlined_call_operand.vmem [shape: f32[8,256], index: 1, kind: input, shape index: {}]   ;;  %s101_s4 = inlined_call_operand.vmem [shape: f32[8,256], index: 4, kind: output, shape index: {}, may-alias: {0,4}]  }
   0x1   :  { %46 = vset.pattern.permute.xlu0 %v47_v0  ;;  %v21_v1 = vld [vmem:[%s97_s2] sm:$0xff]  ;;  %v20_v4 = vld [vmem:[%s99_s0 + $0x8] sm:$0xff] }
   0x2   :  { %24 = vperm.xlu0 %46, %v21_v1   ;;  %v31_v2 = vld [vmem:[%s98_s3] sm:$0xff]  ;;  %v18_v7 = vld [vmem:[%s100_s1 + $0x8] sm:$0xff] }
   0x3   :  { %v19_v3 = vld [vmem:[%s99_s0] sm:$0xff] }
   0x4   :  { %v17_v6 = vld [vmem:[%s100_s1] sm:$0xff] }
   0x6   :  { %34 = vperm.xlu0 %46, %v31_v2  }
  0x81   :  { %v25_v5 = vpop.permute.xlu0 %24 }
  0x82   :  { %v27_v8 = vmul.f32 %v25_v5, %v19_v3  ;;  %v28_v9 = vmul.f32 %v25_v5, %v20_v4 }
  0x84   :  { %v29_v10 = vadd.f32 %v27_v8, %v17_v6  ;;  %v30_v11 = vadd.f32 %v28_v9, %v18_v7 }
  0x85   :  { %v35_v12 = vpop.permute.xlu0 %34 }
  0x86   :  { %v37_v13 = vadd.f32 %v35_v12, %v29_v10  ;;  %v38_v14 = vadd.f32 %v35_v12, %v30_v11 }
  0x88   :  { %39 = vst [vmem:[%s101_s4] sm:$0xff] %v37_v13  ;;  %40 = vst [vmem:[%s101_s4 + $0x8] sm:$0xff] %v38_v14 }

// kernel: resnet_block_pallas.2
= control target key start
LH: loop header
LB: loop body
LE: loop exit
PB: predicated region body
PF: predicated region fallthrough
CT: control target
= control target key end

     0   :  { %s2350_s18 = smov 0   ;;  %s3049_s0 = inlined_call_operand.vmem [shape: f32[2,4,256], index: 0, kind: input, shape index: {}]   ;;  %s3050_s1 = inlined_call_operand.vmem [shape: f32[4,36], index: 1, kind: input, shape index: {}]   ;;  %s3051_s2 = inlined_call_operand.vmem [shape: f32[1,256], index: 2, kind: input, shape index: {}]   ;;  %s3052_s3 = inlined_call_operand.vmem [shape: f32[1,256], index: 3, kind: input, shape index: {}]   ;;  %s3053_s4 = inlined_call_operand.vmem [shape: f32[2,4,256], index: 4, kind: output, shape index: {0}]   ;;  %s3054_s5 = inlined_call_operand.vmem [shape: f32[2,4,2], index: 5, kind: output, shape index: {1}]  }
   0x1 LB: > { %s2151_s19 = sadd.s32 4294967295, %s2267_s18   ;;  %p2155_p0 = scmp.ge.s32.totalorder %s2267_s18, 1  ;;  %s2267_s18 = sphi %s2350_s18, %s16_s18  }
   0x2   : > { %p190_p1 = scmp.lt.s32.totalorder %s2267_s18, 3 }
   0x4   : > { %p191_p2 = pnand %p2155_p0, %p190_p1 }
   0x5   : > { %v269_v0 = vld [vmem:[%s3050_s1] sm:$0xf] (!%p191_p2)  ;;  %p222_p3 = scmp.lt.s32.totalorder (!%p191_p2), %s2151_s19, 1  ;;  %v2269_v1 = vmov (!%p191_p2), 1   ;;  %v2270_v2 = vmov (!%p191_p2), 0   ;;  %v2271_v3 = vmov (!%p191_p2), 2   ;;  %v258_v6 = vlaneseq (!%p191_p2) }
   0x6   : > { %194 = sbr.rel (%p191_p2) target bundleno = 661 (0x295), region = 36  ;;  %2225 = vset.pattern.permute.xlu1 (!%p191_p2), %v2269_v1  ;;  %2224 = vset.pattern.permute.xlu0 (!%p191_p2), %v2270_v2  ;;  %s2272_s26 = smov (!%p191_p2), 17   ;;  %v2273_v5 = vmov (!%p191_p2), 3   ;;  %vm237_vm0 = vcmask (!%p191_p2), 273408   ;;  %v2274_v7 = vmov (!%p191_p2), 0.0   ;;  %v2275_v8 = vmov (!%p191_p2), 4  }
   0x7   : > { %317 = vperm.xlu1 (!%p191_p2), %2225, %v269_v0   ;;  %236 = vst [vmem:[#allocation2] sm:$0xff] (!%p191_p2), %v2274_v7  ;;  %238 = vst.msk [vmem:[#allocation2 + $0x8] sm:$0xf] (!%p191_p2), %vm237_vm0, %v2274_v7  ;;  %v2369_v9 = vshrl.u32 (!%p191_p2), %v258_v6, 7  ;;  %v2276_v10 = vmov (!%p191_p2), 5   ;;  %v2277_v14 = vmov (!%p191_p2), 8  }
   0x8   : > { %v596_v11 = vld [vmem:[%s3050_s1] sm:$0xf] (!%p191_p2)  ;;  %v2278_v16 = vmov (!%p191_p2), 6   ;;  %v2279_v20 = vmov (!%p191_p2), 12   ;;  %v2280_v21 = vmov (!%p191_p2), 7   ;;  %v2281_v23 = vmov (!%p191_p2), 14  }
   0x9   : > { %v2375_v12 = vsub.s32 (!%p191_p2), 0, %v2369_v9  ;;  %v2378_v13 = vsub.s32 (!%p191_p2), 1, %v2369_v9  ;;  %v255_v15 = vld [vmem:[%s3052_s3] sm:$0x3] (!%p191_p2)  ;;  %s2282_s8 = smov (!%p191_p2), 2   ;;  %v2283_v24 = vmov (!%p191_p2), 9  }
   0xa   : > { %v808_v17 = vld [vmem:[%s3050_s1] sm:$0xf] (!%p191_p2)  ;;  %v2284_v25 = vmov (!%p191_p2), 17   ;;  %v2285_v27 = vmov (!%p191_p2), 10   ;;  %s2286_s11 = smov (!%p191_p2), 18   ;;  %v2287_v28 = vmov (!%p191_p2), 21  }
   0xb   : > { %2226 = vset.pattern.permute.xlu1 (!%p191_p2), %v2271_v3  ;;  %v581_v18 = vrot.slane (!%p191_p2), %v255_v15, %v2375_v12  ;;  %v585_v19 = vrot.slane (!%p191_p2), %v255_v15, %v2378_v13  ;;  %v254_v26 = vld [vmem:[%s3051_s2] sm:$0x3] (!%p191_p2)  ;;  %v2288_v32 = vmov (!%p191_p2), 11   ;;  %s2289_s14 = smov (!%p191_p2), 32   ;;  %s2290_s15 = smov (!%p191_p2), 16   ;;  %v2291_v34 = vmov (!%p191_p2), 25  }
   0xc   : > { %343 = vperm.xlu1 (!%p191_p2), %2226, %v269_v0   ;;  %v1219_v29 = vld [vmem:[%s3050_s1] sm:$0xf] (!%p191_p2)  ;;  %v261_v30 = vrot.slane (!%p191_p2), %v254_v26, %v2375_v12  ;;  %v265_v31 = vrot.slane (!%p191_p2), %v254_v26, %v2378_v13  ;;  %v2292_v36 = vmov (!%p191_p2), 13   ;;  %v2293_v37 = vmov (!%p191_p2), 15   ;;  %s2305_s20 = smov (!%p191_p2), 127   ;;  %s2306_s21 = smov (!%p191_p2), 126  }
   0xd   : > { %s3056_s19 = smov (!%p222_p3, %s2151_s19), 1  ;;  %v2388_v22 = vcombine.low %v581_v18, %v585_v19  ;;  %v2407_v35 = vld [vmem:[%s3050_s1] sm:$0xf]  ;;  %v2294_v38 = vmov 16   ;;  %v2295_v39 = vmov 18   ;;  %v2296_v40 = vmov 19  }
   0xe   : > { %s2163_s22 = sshll.u32 %s3056_s19, 3  ;;  %v2400_v33 = vcombine.low %v261_v30, %v265_v31  ;;  %v2297_v41 = vmov 20   ;;  %v2298_v42 = vmov 28   ;;  %v2299_v43 = vmov 22   ;;  %s2307_s23 = smov 112  }
   0xf   : > { %s226_s25 = scalar_lea.vmem %s3049_s0, %s2163_s22  ;;  %v2300_v44 = vmov 23   ;;  %v2301_v45 = vmov 24   ;;  %v2302_v46 = vmov 26   ;;  %v2303_v47 = vmov 27   ;;  %s2309_s24 = smov 34  }
  0x10   : > { %v239_v4 = vld [vmem:[%s226_s25] sm:$0xff]  ;;  %2227 = vset.pattern.permute.xlu1 %v2273_v5  ;;  %v2304_v48 = vmov 29   ;;  %vm248_vm1 = vcmask 1043592   ;;  %vm249_vm2 = vcmask 1047556   ;;  %vm244_vm3 = vcmask 138240   ;;  %s2315_s27 = smov 111   ;;  %s231_s9 = scalar_lea.vmem %s3053_s4, %s2163_s22 }
  0x11   : > { %241 = vrot.lane.b32.xlu0 %v239_v4, %s2272_s26  ;;  %369 = vperm.xlu1 %2227, %v269_v0   ;;  %vm252_vm4 = vcmask 134144   ;;  %vm250_vm5 = vmor %vm249_vm2, %vm248_vm1  ;;  %v2420_v56 = vsub.s32 4, %v2369_v9  ;;  %v2430_v61 = vsub.s32 5, %v2369_v9  ;;  %v2433_v62 = vsub.s32 2, %v2369_v9  ;;  %s2316_s28 = smov 110   ;;  %s2317_s29 = smov 96  }
  0x12   : > { %v2444_v7 = vsub.s32 3, %v2369_v9  ;;  %vm590_vm6 = vcmask 15360   ;;  %vm802_vm7 = vcmask 130048   ;;  %vm1213_vm8 = vcmask 146432   ;;  %s2318_s30 = smov 95   ;;  %s2319_s6 = smov 94  }
  0x13   : > { %vm1425_vm9 = vcmask 261120   ;;  %vm423_vm10 = vcmask 1039360   ;;  %vm643_vm11 = vcmask 1031168   ;;  %vm855_vm12 = vcmask 916480   ;;  %s2160_s10 = sshll.u32 %s3056_s19, 2 }
  0x14   : > { %vm1836_vm13 = vcmask 277504   ;;  %vm1056_vm14 = vcmask 908288   ;;  %vm1266_vm15 = vcmask 900096   ;;  %vm1478_vm0 = vcmask 785408   ;;  %s235_s13 = scalar_lea.vmem %s3054_s5, %s2160_s10 }
  0x15   : > { %291 = vperm.xlu0 %2224, %v269_v0   ;;  %2229 = vset.pattern.permute.xlu1 %v2276_v10  ;;  %v2448_v10 = vsub.s32 6, %v2369_v9  ;;  %vm1679_vm1 = vcmask 777216   ;;  %vm1889_vm2 = vcmask 769024  }
  0x16   : > { %458 = vperm.xlu1 %2229, %v269_v0  }
  0x19   : > { %2228 = vset.pattern.permute.xlu0 %v2275_v8 }
  0x1a   : > { %408 = vperm.xlu0 %2228, %v269_v0   ;;  %2230 = vset.pattern.permute.xlu1 %v2278_v16 }
  0x1b   : > { %507 = vperm.xlu1 %2230, %v269_v0  }
  0x1e   : > { %2232 = vset.pattern.permute.xlu0 %v2277_v14 }
  0x1f   : > { %628 = vperm.xlu0 %2232, %v596_v11   ;;  %2231 = vset.pattern.permute.xlu1 %v2280_v21 }
  0x20   : > { %556 = vperm.xlu1 %2231, %v269_v0  }
  0x23   : > { %2236 = vset.pattern.permute.xlu0 %v2279_v20  ;;  %v2461_v20 = vsub.s32 7, %v2369_v9 }
  0x24   : > { %840 = vperm.xlu0 %2236, %v808_v17   ;;  %587 = vrot.lane.b32.xlu1 %v2388_v22, %s2282_s8 }
  0x25   : > { %2233 = vset.pattern.permute.xlu1 %v2283_v24 }
  0x28   : > { %2238 = vset.pattern.permute.xlu0 %v2281_v23  ;;  %678 = vperm.xlu1 %2233, %v596_v11  }
  0x29   : > { %939 = vperm.xlu0 %2238, %v808_v17  }
  0x2c   : > { %2234 = vset.pattern.permute.xlu1 %v2285_v27 }
  0x2d   : > { %2241 = vset.pattern.permute.xlu0 %v2284_v25  ;;  %727 = vperm.xlu1 %2234, %v596_v11  }
  0x2e   : > { %1091 = vperm.xlu0 %2241, %v808_v17  }
  0x31   : > { %2235 = vset.pattern.permute.xlu1 %v2288_v32 }
  0x32   : > { %1210 = vrot.lane.b32.xlu0 %v2388_v22, %s2286_s11  ;;  %776 = vperm.xlu1 %2235, %v596_v11  }
  0x33   : > { %2245 = vset.pattern.permute.xlu0 %v2287_v28 }
  0x36   : > { %1301 = vperm.xlu0 %2245, %v1219_v29   ;;  %799 = vrot.lane.b32.xlu1 %v2400_v33, %s2290_s15 }
  0x37   : > { %2237 = vset.pattern.permute.xlu1 %v2292_v36 }
  0x3a   : > { %1422 = vrot.lane.b32.xlu0 %v2400_v33, %s2289_s14  ;;  %890 = vperm.xlu1 %2237, %v808_v17  }
  0x3b   : > { %2249 = vset.pattern.permute.xlu0 %v2291_v34 }
  0x3e   : > { %1513 = vperm.xlu0 %2249, %v2407_v35   ;;  %2239 = vset.pattern.permute.xlu1 %v2293_v37 }
  0x3f   : > { %988 = vperm.xlu1 %2239, %v808_v17  }
  0x42   : > { %2252 = vset.pattern.permute.xlu0 %v2298_v42 }
  0x43   : > { %2240 = vset.pattern.permute.xlu1 %v2294_v38 }
  0x44   : > { %1041 = vperm.xlu1 %2240, %v808_v17  }
  0x48   : > { %2242 = vset.pattern.permute.xlu1 %v2295_v39 }
  0x49   : > { %1140 = vperm.xlu1 %2242, %v808_v17  }
  0x4d   : > { %2243 = vset.pattern.permute.xlu1 %v2296_v40 }
  0x4e   : > { %1189 = vperm.xlu1 %2243, %v808_v17  }
  0x52   : > { %2244 = vset.pattern.permute.xlu1 %v2297_v41 }
  0x53   : > { %1251 = vperm.xlu1 %2244, %v1219_v29  }
  0x57   : > { %2246 = vset.pattern.permute.xlu1 %v2299_v43 }
  0x58   : > { %1350 = vperm.xlu1 %2246, %v1219_v29  }
  0x5c   : > { %2247 = vset.pattern.permute.xlu1 %v2300_v44 }
  0x5d   : > { %1399 = vperm.xlu1 %2247, %v1219_v29  }
  0x61   : > { %2248 = vset.pattern.permute.xlu1 %v2301_v45 }
  0x62   : > { %1463 = vperm.xlu1 %2248, %v2407_v35  }
  0x66   : > { %2250 = vset.pattern.permute.xlu1 %v2302_v46 }
  0x67   : > { %1562 = vperm.xlu1 %2250, %v2407_v35  }
  0x6b   : > { %2251 = vset.pattern.permute.xlu1 %v2303_v47 }
  0x6c   : > { %1611 = vperm.xlu1 %2251, %v2407_v35  }
  0x70   : > { %2253 = vset.pattern.permute.xlu1 %v2304_v48 }
  0x83   : > { %v242_v49 = vpop.permute.xlu0 %241 }
  0x84   : > { %v243_v50 = vrot.slane %v242_v49, 4 }
  0x86   : > { %v245_v51 = vsel %vm244_vm3, %v243_v50, %v242_v49  ;;  %253 = vst.msk [vmem:[#allocation2 + $0x8] sm:$0xf] %vm252_vm4, %v243_v50  ;;  %v2413_v52 = vpop.permute.xlu1 %317  ;;  %vm2048_vm3 = vcmask 1043456   ;;  %vm2054_vm4 = vcmask 3072  }
  0x87   : > { %251 = vst.msk [vmem:[#allocation2] sm:$0xff] %vm250_vm5, %v245_v51  ;;  %vm2063_vm5 = vcmask 11272  }
  0x8b   : > { %v2415_v53 = vpop.permute.xlu1 %343 }
  0x8d   : > { %v377_v55 = vld [vmem:[#allocation2 + $0x8] sm:$0xf] }
  0x8e   : > { %v2417_v54 = vld [vmem:[#allocation2] sm:$0xff]  ;;  %v391_v58 = vrot.slane %v377_v55, %v2375_v12  ;;  %v441_v1 = vrot.slane %v377_v55, %v2378_v13  ;;  %v490_v8 = vrot.slane %v377_v55, %v2433_v62  ;;  %v539_v19 = vrot.slane %v377_v55, %v2444_v7 }
  0x8f   : > { %v383_v59 = vrot.slane %v2417_v54, %v2375_v12  ;;  %v387_v2 = vrot.slane %v2417_v54, %v2420_v56  ;;  %v437_v15 = vrot.slane %v2417_v54, %v2430_v61  ;;  %v486_v24 = vrot.slane %v2417_v54, %v2448_v10 }
  0x90   : > { %v2427_v60 = vpop.permute.xlu1 %369  ;;  %v406_v63 = vrot.slane %v391_v58, %v2375_v12  ;;  %v456_v11 = vrot.slane %v441_v1, %v2378_v13  ;;  %v505_v21 = vrot.slane %v490_v8, %v2433_v62  ;;  %v554_v27 = vrot.slane %v539_v19, %v2444_v7 }
  0x91   : > { %v2437_v0 = vrot.slane %v383_v59, %v2375_v12  ;;  %v2454_v14 = vrot.slane %v387_v2, %v2375_v12  ;;  %v2467_v23 = vrot.slane %v437_v15, %v2378_v13  ;;  %v2476_v9 = vrot.slane %v486_v24, %v2433_v62 }
  0x92   : > { %v433_v29 = vrot.slane %v2417_v54, %v2378_v13  ;;  %v535_v30 = vrot.slane %v2417_v54, %v2461_v20  ;;  %v482_v38 = vrot.slane %v2417_v54, %v2433_v62  ;;  %v531_v44 = vrot.slane %v2417_v54, %v2444_v7 }
  0x94   : > { %v2422_v57 = vpop.permute.xlu0 %291  ;;  %v2486_v36 = vrot.slane %v433_v29, %v2378_v13  ;;  %v2489_v37 = vrot.slane %v535_v30, %v2444_v7  ;;  %v2505_v47 = vrot.slane %v482_v38, %v2433_v62  ;;  %v798_v30 = vld [vmem:[#allocation2 + $0x8] sm:$0xf] }
  0x95   : > { %v459_v4 = vpop.permute.xlu1 %458 }
  0x96   : > { %v463_v16 = vmul.f32 %v459_v4, %v456_v11  ;;  %v462_v26 = vmul.f32 %v459_v4, %v2467_v23  ;;  %v461_v40 = vmul.f32 %v459_v4, %v2486_v36 }
  0x99   : > { %v409_v3 = vpop.permute.xlu0 %408 }
  0x9a   : > { %v413_v5 = vmul.f32 %v409_v3, %v406_v63  ;;  %v411_v6 = vmul.f32 %v409_v3, %v2437_v0  ;;  %v412_v17 = vmul.f32 %v409_v3, %v2454_v14  ;;  %v508_v18 = vpop.permute.xlu1 %507 }
  0x9b   : > { %v512_v25 = vmul.f32 %v508_v18, %v505_v21  ;;  %v511_v32 = vmul.f32 %v508_v18, %v2476_v9  ;;  %v510_v48 = vmul.f32 %v508_v18, %v2505_v47 }
  0x9c   : > { %421 = vrot.lane.b32.xlu0 %v413_v5, %s2305_s20  ;;  %417 = vrot.lane.b32.xlu1 %v411_v6, %s2305_s20 }
  0x9e   : > { %v629_v59 = vpop.permute.xlu0 %628 }
  0x9f   : > { %v557_v28 = vpop.permute.xlu1 %556 }
  0xa0   : > { %471 = vrot.lane.b32.xlu0 %v463_v16, %s2305_s20  ;;  %419 = vrot.lane.b32.xlu1 %v412_v17, %s2305_s20  ;;  %v561_v31 = vmul.f32 %v557_v28, %v554_v27  ;;  %v560_v41 = vmul.f32 %v557_v28, %v2489_v37 }
  0xa3   : > { %v588_v34 = vpop.permute.xlu1 %587 }
  0xa4   : > { %520 = vrot.lane.b32.xlu0 %v512_v25, %s2305_s20  ;;  %469 = vrot.lane.b32.xlu1 %v462_v26, %s2305_s20  ;;  %v589_v39 = vrot.slane %v588_v34, 4 }
  0xa6   : > { %v591_v42 = vsel %vm590_vm6, %v589_v39, %v588_v34  ;;  %v595_v43 = vmul.f32 %v589_v39, %v377_v55  ;;  %v2514_v55 = vrot.slane %v531_v44, %v2444_v7 }
  0xa7   : > { %v2498_v45 = vmul.f32 %v591_v42, %v2417_v54  ;;  %v2502_v46 = vpop.permute.xlu1 %678 }
  0xa8   : > { %569 = vrot.lane.b32.xlu0 %v561_v31, %s2305_s20  ;;  %518 = vrot.lane.b32.xlu1 %v511_v32, %s2305_s20  ;;  %v610_v50 = vrot.slane %v595_v43, %v2375_v12  ;;  %v559_v1 = vmul.f32 %v557_v28, %v2514_v55  ;;  %v661_v2 = vrot.slane %v595_v43, %v2378_v13 }
  0xa9   : > { %v602_v49 = vrot.slane %v2498_v45, %v2375_v12  ;;  %v606_v51 = vrot.slane %v2498_v45, %v2420_v56  ;;  %v657_v6 = vrot.slane %v2498_v45, %v2430_v61  ;;  %v710_v8 = vrot.slane %v595_v43, %v2433_v62 }
  0xaa   : > { %v625_v4 = vrot.slane %v610_v50, %v2375_v12  ;;  %v706_v11 = vrot.slane %v2498_v45, %v2448_v10  ;;  %v676_v18 = vrot.slane %v661_v2, %v2378_v13  ;;  %v759_v29 = vrot.slane %v595_v43, %v2444_v7 }
  0xab   : > { %v617_v58 = vrot.slane %v602_v49, %v2375_v12  ;;  %v621_v5 = vrot.slane %v606_v51, %v2375_v12  ;;  %v672_v19 = vrot.slane %v657_v6, %v2378_v13  ;;  %v725_v26 = vrot.slane %v710_v8, %v2433_v62 }
  0xac   : > { %467 = vrot.lane.b32.xlu0 %v461_v40, %s2305_s20  ;;  %567 = vrot.lane.b32.xlu1 %v560_v41, %s2305_s20  ;;  %v2518_v63 = vpop.permute.xlu1 %727  ;;  %v633_v16 = vmul.f32 %v629_v59, %v625_v4  ;;  %v683_v24 = vmul.f32 %v2502_v46, %v676_v18  ;;  %v721_v27 = vrot.slane %v706_v11, %v2433_v62 }
  0xad   : > { %v631_v3 = vmul.f32 %v629_v59, %v617_v58  ;;  %v632_v17 = vmul.f32 %v629_v59, %v621_v5  ;;  %v682_v25 = vmul.f32 %v2502_v46, %v672_v19  ;;  %v755_v31 = vrot.slane %v2498_v45, %v2461_v20 }
  0xae   : > { %v732_v39 = vmul.f32 %v2518_v63, %v725_v26  ;;  %v731_v40 = vmul.f32 %v2518_v63, %v721_v27  ;;  %v774_v41 = vrot.slane %v759_v29, %v2444_v7  ;;  %v653_v49 = vrot.slane %v2498_v45, %v2378_v13 }
  0xaf   : > { %v770_v43 = vrot.slane %v755_v31, %v2444_v7  ;;  %v702_v6 = vrot.slane %v2498_v45, %v2433_v62  ;;  %v751_v18 = vrot.slane %v2498_v45, %v2444_v7  ;;  %v2308_v45 = vmov 30   ;;  %v1842_v31 = vld [vmem:[%s3050_s1] sm:$0xf] }
  0xb0   : > { %516 = vrot.lane.b32.xlu0 %v510_v48, %s2305_s20  ;;  %637 = vrot.lane.b32.xlu1 %v631_v3, %s2306_s21  ;;  %v668_v2 = vrot.slane %v653_v49, %v2378_v13 }
  0xb1   : > { %v777_v15 = vpop.permute.xlu1 %776 }
  0xb2   : > { %v781_v48 = vmul.f32 %v777_v15, %v774_v41  ;;  %v780_v50 = vmul.f32 %v777_v15, %v770_v43  ;;  %v681_v8 = vmul.f32 %v2502_v46, %v668_v2 }
  0xb4   : > { %565 = vrot.lane.b32.xlu0 %v559_v1, %s2305_s20  ;;  %639 = vrot.lane.b32.xlu1 %v632_v17, %s2306_s21  ;;  %v841_v1 = vpop.permute.xlu0 %840 }
  0xb5   : > { %v800_v21 = vpop.permute.xlu1 %799 }
  0xb6   : > { %v801_v28 = vrot.slane %v800_v21, 4 }
  0xb8   : > { %641 = vrot.lane.b32.xlu0 %v633_v16, %s2306_s21  ;;  %689 = vrot.lane.b32.xlu1 %v682_v25, %s2306_s21  ;;  %v803_v32 = vsel %vm802_vm7, %v801_v28, %v800_v21  ;;  %v2544_v34 = vmul.f32 %v801_v28, %v798_v30  ;;  %v717_v16 = vrot.slane %v702_v6, %v2433_v62 }
  0xb9   : > { %v2547_v38 = vmul.f32 %v803_v32, %v2417_v54  ;;  %v891_v19 = vpop.permute.xlu1 %890  ;;  %v766_v25 = vrot.slane %v751_v18, %v2444_v7 }
  0xba   : > { %v822_v42 = vrot.slane %v2544_v34, %v2375_v12  ;;  %v730_v21 = vmul.f32 %v2518_v63, %v717_v16 }
  0xbb   : > { %v814_v44 = vrot.slane %v2547_v38, %v2375_v12  ;;  %v818_v59 = vrot.slane %v2547_v38, %v2420_v56  ;;  %v869_v17 = vrot.slane %v2547_v38, %v2430_v61  ;;  %v865_v46 = vrot.slane %v2547_v38, %v2378_v13 }
  0xbc   : > { %691 = vrot.lane.b32.xlu0 %v683_v24, %s2306_s21  ;;  %738 = vrot.lane.b32.xlu1 %v731_v40, %s2306_s21  ;;  %v837_v51 = vrot.slane %v822_v42, %v2375_v12  ;;  %v779_v26 = vmul.f32 %v777_v15, %v766_v25  ;;  %v2310_v15 = vmov 32   ;;  %v873_v40 = vrot.slane %v2544_v34, %v2378_v13 }
  0xbd   : > { %v829_v58 = vrot.slane %v814_v44, %v2375_v12  ;;  %v833_v5 = vrot.slane %v818_v59, %v2375_v12  ;;  %v884_v24 = vrot.slane %v869_v17, %v2378_v13  ;;  %v880_v28 = vrot.slane %v865_v46, %v2378_v13 }
  0xbe   : > { %v845_v3 = vmul.f32 %v841_v1, %v837_v51  ;;  %v989_v29 = vpop.permute.xlu1 %988  ;;  %v918_v41 = vrot.slane %v2547_v38, %v2448_v10  ;;  %v888_v42 = vrot.slane %v873_v40, %v2378_v13  ;;  %v914_v43 = vrot.slane %v2547_v38, %v2433_v62 }
  0xbf   : > { %v843_v4 = vmul.f32 %v841_v1, %v829_v58  ;;  %v844_v11 = vmul.f32 %v841_v1, %v833_v5  ;;  %v894_v27 = vmul.f32 %v891_v19, %v884_v24  ;;  %v893_v63 = vmul.f32 %v891_v19, %v880_v28  ;;  %v940_v1 = vpop.permute.xlu0 %939 }
  0xc0   : > { %740 = vrot.lane.b32.xlu0 %v732_v39, %s2306_s21  ;;  %787 = vrot.lane.b32.xlu1 %v780_v50, %s2306_s21  ;;  %v2311_v39 = vmov 31   ;;  %v2313_v44 = vmov 33   ;;  %v933_v49 = vrot.slane %v918_v41, %v2433_v62  ;;  %v895_v50 = vmul.f32 %v891_v19, %v888_v42 }
  0xc1   : > { %v963_v51 = vrot.slane %v2547_v38, %v2444_v7  ;;  %v922_v58 = vrot.slane %v2544_v34, %v2433_v62  ;;  %v2314_v59 = vmov 35  }
  0xc2   : > { %v943_v2 = vmul.f32 %v940_v1, %v933_v49 }
  0xc3   : > { %v2593_v30 = vpop.permute.xlu1 %1041  ;;  %v978_v6 = vrot.slane %v963_v51, %v2444_v7  ;;  %v1092_v24 = vpop.permute.xlu0 %1091  ;;  %v2669_v51 = vmul.f32 %v2400_v33, %v2417_v54 }
  0xc4   : > { %789 = vrot.lane.b32.xlu0 %v781_v48, %s2306_s21  ;;  %849 = vrot.lane.b32.xlu1 %v843_v4, %s2307_s23  ;;  %v1044_v28 = vmul.f32 %v2593_v30, %v2437_v0  ;;  %v1095_v42 = vmul.f32 %v1092_v24, %v2467_v23 }
  0xc5   : > { %v991_v16 = vmul.f32 %v989_v29, %v978_v6  ;;  %v301_v33 = vrot.slane %v2669_v51, %v2378_v13 }
  0xc8   : > { %853 = vrot.lane.b32.xlu0 %v845_v3, %s2307_s23  ;;  %851 = vrot.lane.b32.xlu1 %v844_v11, %s2307_s23  ;;  %v2600_v32 = vpop.permute.xlu1 %1140  ;;  %v971_v3 = vrot.slane %v2544_v34, %v2444_v7  ;;  %v967_v11 = vrot.slane %v2547_v38, %v2461_v20 }
  0xca   : > { %v986_v18 = vrot.slane %v971_v3, %v2444_v7  ;;  %v982_v34 = vrot.slane %v967_v11, %v2444_v7 }
  0xcc   : > { %687 = vrot.lane.b32.xlu0 %v681_v8, %s2306_s21  ;;  %1714 = vperm.xlu1 %2253, %v2407_v35   ;;  %v937_v8 = vrot.slane %v922_v58, %v2433_v62  ;;  %v993_v46 = vmul.f32 %v989_v29, %v986_v18  ;;  %v992_v38 = vmul.f32 %v989_v29, %v982_v34 }
  0xcd   : > { %v2610_v48 = vpop.permute.xlu1 %1189  ;;  %v305_v18 = vrot.slane %v2669_v51, %v2430_v61  ;;  %v274_v34 = vrot.slane %v2669_v51, %v2375_v12 }
  0xce   : > { %v944_v17 = vmul.f32 %v940_v1, %v937_v8 }
  0xd0   : > { %736 = vrot.lane.b32.xlu0 %v730_v21, %s2306_s21  ;;  %901 = vrot.lane.b32.xlu1 %v894_v27, %s2307_s23  ;;  %v1010_v21 = vld [vmem:[#allocation2 + $0x8] sm:$0xf]  ;;  %v1045_v27 = vmul.f32 %v2593_v30, %v2454_v14 }
  0xd1   : > { %2254 = vset.pattern.permute.xlu1 %v2308_v45  ;;  %v1024_v25 = vrot.slane %v1010_v21, %v2375_v12  ;;  %v1211_v45 = vpop.permute.xlu0 %1210  ;;  %v1172_v58 = vrot.slane %v1010_v21, %v2444_v7 }
  0xd2   : > { %v2621_v4 = vpop.permute.xlu1 %1251  ;;  %v1212_v41 = vrot.slane %v1211_v45, 4 }
  0xd3   : > { %v1039_v29 = vrot.slane %v1024_v25, %v2375_v12  ;;  %v1187_v6 = vrot.slane %v1172_v58, %v2444_v7  ;;  %v311_v25 = vrot.slane %v301_v33, %v2378_v13  ;;  %v357_v58 = vrot.slane %v2669_v51, %v2461_v20 }
  0xd4   : > { %785 = vrot.lane.b32.xlu0 %v779_v26, %s2306_s21  ;;  %1763 = vperm.xlu1 %2254, %v2407_v35   ;;  %v2686_v8 = vmul.f32 %v1212_v41, %v1010_v21 }
  0xd5   : > { %v320_v33 = vmul.f32 %v2413_v52, %v311_v25 }
  0xd7   : > { %v2631_v19 = vpop.permute.xlu1 %1350 }
  0xd8   : > { %899 = vrot.lane.b32.xlu0 %v893_v63, %s2307_s23  ;;  %1833 = vrot.lane.b32.xlu1 %v2388_v22, %s2309_s24  ;;  %v2312_v22 = vmov 34   ;;  %v1074_v63 = vrot.slane %v1010_v21, %v2378_v13 }
  0xd9   : > { %2256 = vset.pattern.permute.xlu1 %v2310_v15  ;;  %v1046_v15 = vmul.f32 %v2593_v30, %v1039_v29  ;;  %v1123_v30 = vrot.slane %v1010_v21, %v2433_v62  ;;  %v278_v21 = vrot.slane %v2669_v51, %v2420_v56 }
  0xda   : > { %v1089_v40 = vrot.slane %v1074_v63, %v2378_v13  ;;  %v315_v63 = vrot.slane %v305_v18, %v2378_v13 }
  0xdc   : > { %1664 = vperm.xlu0 %2252, %v2407_v35   ;;  %1874 = vperm.xlu1 %2256, %v1842_v31   ;;  %v2638_v26 = vpop.permute.xlu1 %1399 }
  0xe0   : > { %2255 = vset.pattern.permute.xlu0 %v2311_v39  ;;  %2258 = vset.pattern.permute.xlu1 %v2312_v22  ;;  %v2655_v22 = vpop.permute.xlu0 %1301 }
  0xe1   : > { %1812 = vperm.xlu0 %2255, %v2407_v35   ;;  %1973 = vperm.xlu1 %2258, %v1842_v31   ;;  %v929_v35 = vrot.slane %v914_v43, %v2433_v62  ;;  %v2650_v39 = vpop.permute.xlu1 %1463  ;;  %v1096_v43 = vmul.f32 %v1092_v24, %v1089_v40 }
  0xe3   : > { %v942_v5 = vmul.f32 %v940_v1, %v929_v35  ;;  %v1144_v35 = vmul.f32 %v2600_v32, %v2476_v9 }
  0xe4   : > { %v2675_v1 = vpop.permute.xlu0 %1422 }
  0xe5   : > { %2257 = vset.pattern.permute.xlu0 %v2313_v44  ;;  %2259 = vset.pattern.permute.xlu1 %v2314_v59  ;;  %v1214_v44 = vsel %vm1213_vm8, %v1212_v41, %v1211_v45 }
  0xe6   : > { %1924 = vperm.xlu0 %2257, %v1842_v31   ;;  %2022 = vperm.xlu1 %2259, %v1842_v31   ;;  %v1094_v31 = vmul.f32 %v1092_v24, %v2486_v36  ;;  %v2661_v49 = vpop.permute.xlu1 %1562  ;;  %v1193_v24 = vmul.f32 %v2610_v48, %v2489_v37 }
  0xe8   : > { %v2688_v11 = vpop.permute.xlu0 %1513 }
  0xea   : > { %903 = vrot.lane.b32.xlu0 %v895_v50, %s2307_s23  ;;  %948 = vrot.lane.b32.xlu1 %v942_v5, %s2307_s23  ;;  %v1143_v50 = vmul.f32 %v2600_v32, %v2505_v47  ;;  %v1192_v5 = vmul.f32 %v2610_v48, %v2514_v55 }
  0xeb   : > { %2260 = vset.pattern.permute.xlu0 %v2314_v59  ;;  %v2673_v59 = vmul.f32 %v1214_v44, %v2417_v54  ;;  %v327_v44 = vrot.slane %v2669_v51, %v2433_v62 }
  0xed   : > { %v1280_v40 = vrot.slane %v2673_v59, %v2430_v61 }
  0xee   : > { %950 = vrot.lane.b32.xlu0 %v943_v2, %s2307_s23  ;;  %952 = vrot.lane.b32.xlu1 %v944_v17, %s2307_s23  ;;  %v1138_v2 = vrot.slane %v1123_v30, %v2433_v62  ;;  %v2692_v17 = vpop.permute.xlu1 %1611  ;;  %v1284_v30 = vrot.slane %v2686_v8, %v2378_v13 }
  0xf0   : > { %v1145_v3 = vmul.f32 %v2600_v32, %v1138_v2  ;;  %v1229_v32 = vrot.slane %v2673_v59, %v2420_v56 }
  0xf2   : > { %997 = vrot.lane.b32.xlu0 %v991_v16, %s2307_s23  ;;  %999 = vrot.lane.b32.xlu1 %v992_v38, %s2307_s23  ;;  %v1225_v16 = vrot.slane %v2673_v59, %v2375_v12  ;;  %v1276_v38 = vrot.slane %v2673_v59, %v2378_v13 }
  0xf6   : > { %1001 = vrot.lane.b32.xlu0 %v993_v46, %s2307_s23  ;;  %1050 = vrot.lane.b32.xlu1 %v1044_v28, %s2315_s27  ;;  %v1194_v46 = vmul.f32 %v2610_v48, %v1187_v6  ;;  %v1240_v28 = vrot.slane %v1225_v16, %v2375_v12  ;;  %v1244_v48 = vrot.slane %v1229_v32, %v2375_v12 }
  0xf7   : > { %v321_v6 = vmul.f32 %v2413_v52, %v315_v63  ;;  %v1424_v52 = vrot.slane %v2675_v1, 4  ;;  %v367_v63 = vrot.slane %v357_v58, %v2444_v7 }
  0xf8   : > { %v1254_v41 = vmul.f32 %v2621_v4, %v1240_v28 }
  0xfa   : > { %1052 = vrot.lane.b32.xlu0 %v1045_v27, %s2315_s27  ;;  %1054 = vrot.lane.b32.xlu1 %v1046_v15, %s2315_s27  ;;  %v1233_v27 = vrot.slane %v2686_v8, %v2375_v12  ;;  %v284_v15 = vrot.slane %v274_v34, %v2375_v12 }
  0xfc   : > { %v1248_v2 = vrot.slane %v1233_v27, %v2375_v12  ;;  %v294_v16 = vmul.f32 %v2422_v57, %v284_v15 }
  0xfe   : > { %1100 = vrot.lane.b32.xlu0 %v1094_v31, %s2315_s27  ;;  %1102 = vrot.lane.b32.xlu1 %v1095_v42, %s2315_s27  ;;  %v288_v31 = vrot.slane %v278_v21, %v2375_v12  ;;  %v1255_v42 = vmul.f32 %v2621_v4, %v1244_v48  ;;  %v1256_v18 = vmul.f32 %v2621_v4, %v1248_v2 }
  0xff   : > { %v1299_v21 = vrot.slane %v1284_v30, %v2378_v13  ;;  %v1329_v4 = vrot.slane %v2673_v59, %v2448_v10  ;;  %v322_v27 = vadd.f32 %v320_v33, %v294_v16  ;;  %v1426_v30 = vsel %vm1425_vm9, %v1424_v52, %v2675_v1 }
 0x100   : > { %v295_v32 = vmul.f32 %v2422_v57, %v288_v31  ;;  %v2784_v16 = vmul.f32 %v1426_v30, %v2417_v54 }
 0x101   : > { %v1306_v31 = vmul.f32 %v2655_v22, %v1299_v21  ;;  %v1382_v21 = vrot.slane %v2686_v8, %v2444_v7 }
 0x102   : > { %1104 = vrot.lane.b32.xlu0 %v1096_v43, %s2315_s27  ;;  %1149 = vrot.lane.b32.xlu1 %v1143_v50, %s2315_s27  ;;  %v1291_v43 = vrot.slane %v1276_v38, %v2378_v13  ;;  %v331_v50 = vrot.slane %v2669_v51, %v2448_v10  ;;  %v1325_v38 = vrot.slane %v2673_v59, %v2433_v62 }
 0x103   : > { %v323_v48 = vadd.f32 %v321_v6, %v295_v32  ;;  %v373_v6 = vmul.f32 %v2427_v60, %v367_v63  ;;  %v1378_v32 = vrot.slane %v2673_v59, %v2461_v20 }
 0x104   : > { %v1304_v34 = vmul.f32 %v2655_v22, %v1291_v43  ;;  %v1340_v43 = vrot.slane %v1325_v38, %v2433_v62 }
 0x106   : > { %1151 = vrot.lane.b32.xlu0 %v1144_v35, %s2315_s27  ;;  %1153 = vrot.lane.b32.xlu1 %v1145_v3, %s2315_s27  ;;  %v353_v35 = vrot.slane %v2669_v51, %v2444_v7  ;;  %v1295_v51 = vrot.slane %v1280_v40, %v2378_v13 }
 0x108   : > { %v363_v28 = vrot.slane %v353_v35, %v2444_v7  ;;  %v1305_v15 = vmul.f32 %v2655_v22, %v1295_v51  ;;  %v1374_v22 = vrot.slane %v2673_v59, %v2444_v7 }
 0x10a   : > { %1198 = vrot.lane.b32.xlu0 %v1192_v5, %s2315_s27  ;;  %1200 = vrot.lane.b32.xlu1 %v1193_v24, %s2315_s27  ;;  %v337_v24 = vrot.slane %v327_v44, %v2433_v62  ;;  %v372_v1 = vmul.f32 %v2427_v60, %v363_v28  ;;  %v1421_v60 = vld [vmem:[#allocation2 + $0x8] sm:$0xf]  ;;  %v1393_v28 = vrot.slane %v1378_v32, %v2444_v7 }
 0x10b   : > { %v2797_v59 = vmul.f32 %v1424_v52, %v1421_v60  ;;  %v1397_v52 = vrot.slane %v1382_v21, %v2444_v7 }
 0x10c   : > { %v346_v40 = vmul.f32 %v2415_v53, %v337_v24 }
 0x10d   : > { %v1404_v30 = vmul.f32 %v2638_v26, %v1397_v52 }
 0x10e   : > { %v2713_v45 = vpop.permute.xlu1 %417  ;;  %1202 = vrot.lane.b32.xlu0 %v1194_v46, %s2315_s27  ;;  %v2717_v29 = vpop.permute.xlu0 %421  ;;  %1260 = vrot.lane.b32.xlu1 %v1254_v41, %s2316_s28  ;;  %v341_v46 = vrot.slane %v331_v50, %v2433_v62  ;;  %v1344_v50 = vrot.slane %v1329_v4, %v2433_v62  ;;  %v348_v35 = vadd.f32 %v346_v40, %v322_v27 }
 0x110   : > { %v347_v41 = vmul.f32 %v2415_v53, %v341_v46  ;;  %v1353_v53 = vmul.f32 %v2631_v19, %v1340_v43  ;;  %v1354_v33 = vmul.f32 %v2631_v19, %v1344_v50  ;;  %v374_v24 = vadd.f32 %v372_v1, %v348_v35 }
 0x111   : > { %v1492_v50 = vrot.slane %v2784_v16, %v2430_v61 }
 0x112   : > { %v2739_v3 = vpop.permute.xlu1 %419  ;;  %1262 = vrot.lane.b32.xlu0 %v1255_v42, %s2316_s28  ;;  %v2743_v5 = vpop.permute.xlu0 %471  ;;  %1264 = vrot.lane.b32.xlu1 %v1256_v18, %s2316_s28  ;;  %v1333_v42 = vrot.slane %v2686_v8, %v2433_v62  ;;  %v349_v58 = vadd.f32 %v347_v41, %v323_v48  ;;  %v1437_v48 = vrot.slane %v2784_v16, %v2375_v12 }
 0x113   : > { %v424_v46 = vsel %vm423_vm10, %v2713_v45, %v2739_v3  ;;  %v425_v8 = vsel %vm423_vm10, %v2739_v3, %v2717_v29  ;;  %v1488_v29 = vrot.slane %v2784_v16, %v2378_v13  ;;  %v1403_v3 = vmul.f32 %v2638_v26, %v1393_v28 }
 0x114   : > { %v1348_v51 = vrot.slane %v1333_v42, %v2433_v62  ;;  %v375_v38 = vadd.f32 %v373_v6, %v349_v58  ;;  %v1452_v35 = vrot.slane %v1437_v48, %v2375_v12 }
 0x115   : > { %v1503_v32 = vrot.slane %v1488_v29, %v2378_v13  ;;  %v1545_v29 = vrot.slane %v2797_v59, %v2433_v62 }
 0x116   : > { %v470_v25 = vpop.permute.xlu1 %469  ;;  %1310 = vrot.lane.b32.xlu0 %v1304_v34, %s2316_s28  ;;  %v2760_v57 = vpop.permute.xlu0 %520  ;;  %1312 = vrot.lane.b32.xlu1 %v1305_v15, %s2316_s28  ;;  %v1389_v34 = vrot.slane %v1374_v22, %v2444_v7  ;;  %v1355_v4 = vmul.f32 %v2631_v19, %v1348_v51  ;;  %v428_v15 = vadd.f32 %v424_v46, %v374_v24 }
 0x117   : > { %v474_v40 = vsel %vm423_vm10, %v470_v25, %v2743_v5  ;;  %v429_v42 = vadd.f32 %v425_v8, %v375_v38  ;;  %v1445_v22 = vrot.slane %v2797_v59, %v2375_v12  ;;  %v1507_v46 = vrot.slane %v1492_v50, %v2378_v13 }
 0x118   : > { %v1402_v27 = vmul.f32 %v2638_v26, %v1389_v34 }
 0x119   : > { %v1460_v21 = vrot.slane %v1445_v22, %v2375_v12 }
 0x11a   : > { %1314 = vrot.lane.b32.xlu0 %v1306_v31, %s2316_s28  ;;  %v570_v44 = vpop.permute.xlu0 %569  ;;  %v519_v2 = vpop.permute.xlu1 %518  ;;  %1359 = vrot.lane.b32.xlu1 %v1353_v53, %s2316_s28  ;;  %v1441_v31 = vrot.slane %v2784_v16, %v2420_v56 }
 0x11b   : > { %v523_v5 = vsel %vm423_vm10, %v519_v2, %v2760_v57  ;;  %v1496_v57 = vrot.slane %v2797_v59, %v2378_v13  ;;  %v1468_v28 = vmul.f32 %v2650_v39, %v1460_v21 }
 0x11c   : > { %v1456_v26 = vrot.slane %v1441_v31, %v2375_v12 }
 0x11e   : > { %1361 = vrot.lane.b32.xlu0 %v1354_v33, %s2316_s28  ;;  %v468_v18 = vpop.permute.xlu0 %467  ;;  %v568_v45 = vpop.permute.xlu1 %567  ;;  %1363 = vrot.lane.b32.xlu1 %v1355_v4, %s2316_s28  ;;  %v1467_v34 = vmul.f32 %v2650_v39, %v1456_v26 }
 0x11f   : > { %v473_v63 = vsel %vm423_vm10, %v468_v18, %v470_v25  ;;  %v478_v25 = vadd.f32 %v474_v40, %v429_v42  ;;  %v572_v1 = vsel %vm423_vm10, %v568_v45, %v570_v44 }
 0x120   : > { %v477_v43 = vadd.f32 %v473_v63, %v428_v15  ;;  %v1511_v63 = vrot.slane %v1496_v57, %v2378_v13  ;;  %v1537_v15 = vrot.slane %v2784_v16, %v2433_v62 }
 0x121   : > { %v527_v51 = vadd.f32 %v523_v5, %v478_v25  ;;  %v1594_v25 = vrot.slane %v2797_v59, %v2444_v7 }
 0x122   : > { %1408 = vrot.lane.b32.xlu0 %v1402_v27, %s2316_s28  ;;  %v517_v19 = vpop.permute.xlu0 %516  ;;  %v638_v53 = vpop.permute.xlu1 %637  ;;  %1410 = vrot.lane.b32.xlu1 %v1403_v3, %s2316_s28  ;;  %v1516_v27 = vmul.f32 %v2688_v11, %v1503_v32  ;;  %v1552_v3 = vrot.slane %v1537_v15, %v2433_v62 }
 0x123   : > { %v522_v41 = vsel %vm423_vm10, %v517_v19, %v519_v2  ;;  %v1466_v2 = vmul.f32 %v2650_v39, %v1452_v35  ;;  %v576_v24 = vadd.f32 %v572_v1, %v527_v51  ;;  %v1517_v39 = vmul.f32 %v2688_v11, %v1507_v46 }
 0x124   : > { %v526_v58 = vadd.f32 %v522_v41, %v477_v43  ;;  %v1518_v41 = vmul.f32 %v2688_v11, %v1511_v63  ;;  %v1586_v43 = vrot.slane %v2784_v16, %v2444_v7  ;;  %v1565_v11 = vmul.f32 %v2661_v49, %v1552_v3 }
 0x125   : > { %v1609_v51 = vrot.slane %v1594_v25, %v2444_v7 }
 0x126   : > { %1412 = vrot.lane.b32.xlu0 %v1404_v30, %s2316_s28  ;;  %v566_v33 = vpop.permute.xlu0 %565  ;;  %v640_v60 = vpop.permute.xlu1 %639  ;;  %1472 = vrot.lane.b32.xlu1 %v1466_v2, %s2317_s29 }
 0x127   : > { %v571_v6 = vsel %vm423_vm10, %v566_v33, %v568_v45  ;;  %v644_v38 = vsel %vm643_vm11, %v638_v53, %v640_v60  ;;  %v1541_v45 = vrot.slane %v2784_v16, %v2448_v10  ;;  %v1590_v53 = vrot.slane %v2784_v16, %v2461_v20 }
 0x128   : > { %v575_v18 = vadd.f32 %v571_v6, %v526_v58  ;;  %v1560_v58 = vrot.slane %v1545_v29, %v2433_v62  ;;  %v1601_v33 = vrot.slane %v1586_v43, %v2444_v7  ;;  %v1616_v21 = vmul.f32 %v2692_v17, %v1609_v51  ;;  %v1633_v29 = vld [vmem:[#allocation2 + $0x8] sm:$0xf] }
 0x129   : > { %v1556_v42 = vrot.slane %v1541_v45, %v2433_v62  ;;  %v1605_v2 = vrot.slane %v1590_v53, %v2444_v7 }
 0x12a   : > { %1474 = vrot.lane.b32.xlu0 %v1467_v34, %s2317_s29  ;;  %v642_v44 = vpop.permute.xlu0 %641  ;;  %v648_v48 = vadd.f32 %v644_v38, %v575_v18  ;;  %v690_v19 = vpop.permute.xlu1 %689  ;;  %1476 = vrot.lane.b32.xlu1 %v1468_v28, %s2317_s29  ;;  %v1567_v32 = vmul.f32 %v2661_v49, %v1560_v58  ;;  %v1614_v57 = vmul.f32 %v2692_v17, %v1601_v33 }
 0x12b   : > { %v645_v4 = vsel %vm643_vm11, %v640_v60, %v642_v44  ;;  %v1566_v35 = vmul.f32 %v2661_v49, %v1556_v42  ;;  %v1615_v34 = vmul.f32 %v2692_v17, %v1605_v2 }
 0x12c   : > { %v649_v8 = vadd.f32 %v645_v4, %v576_v24 }
 0x12e   : > { %1522 = vrot.lane.b32.xlu0 %v1516_v27, %s2317_s29  ;;  %v692_v52 = vpop.permute.xlu0 %691  ;;  %v739_v30 = vpop.permute.xlu1 %738  ;;  %1524 = vrot.lane.b32.xlu1 %v1517_v39, %s2317_s29 }
 0x12f   : > { %v694_v31 = vsel %vm643_vm11, %v690_v19, %v692_v52 }
 0x130   : > { %v698_v40 = vadd.f32 %v694_v31, %v649_v8 }
 0x132   : > { %1526 = vrot.lane.b32.xlu0 %v1518_v41, %s2317_s29  ;;  %v741_v50 = vpop.permute.xlu0 %740  ;;  %v788_v26 = vpop.permute.xlu1 %787  ;;  %1571 = vrot.lane.b32.xlu1 %v1565_v11, %s2317_s29 }
 0x133   : > { %v743_v22 = vsel %vm643_vm11, %v739_v30, %v741_v50  ;;  %v1697_v50 = vrot.slane %v1633_v29, %v2378_v13 }
 0x134   : > { %v747_v5 = vadd.f32 %v743_v22, %v698_v40 }
 0x136   : > { %1573 = vrot.lane.b32.xlu0 %v1566_v35, %s2317_s29  ;;  %v790_v1 = vpop.permute.xlu0 %789  ;;  %v850_v16 = vpop.permute.xlu1 %849  ;;  %1575 = vrot.lane.b32.xlu1 %v1567_v32, %s2317_s29 }
 0x137   : > { %v792_v6 = vsel %vm643_vm11, %v788_v26, %v790_v1 }
 0x138   : > { %v796_v59 = vadd.f32 %v792_v6, %v747_v5 }
 0x13a   : > { %1620 = vrot.lane.b32.xlu0 %v1614_v57, %s2317_s29  ;;  %v854_v18 = vpop.permute.xlu0 %853  ;;  %v852_v24 = vpop.permute.xlu1 %851  ;;  %1622 = vrot.lane.b32.xlu1 %v1615_v34, %s2317_s29 }
 0x13b   : > { %v856_v60 = vsel %vm855_vm12, %v850_v16, %v852_v24  ;;  %v857_v44 = vsel %vm855_vm12, %v852_v24, %v854_v18 }
 0x13c   : > { %v861_v38 = vadd.f32 %v857_v44, %v796_v59 }
 0x13e   : > { %1624 = vrot.lane.b32.xlu0 %v1616_v21, %s2317_s29  ;;  %v688_v49 = vpop.permute.xlu0 %687 }
 0x13f   : > { %v693_v46 = vsel %vm643_vm11, %v688_v49, %v690_v19  ;;  %v1647_v19 = vrot.slane %v1633_v29, %v2375_v12 }
 0x140   : > { %v697_v4 = vadd.f32 %v693_v46, %v648_v48 }
 0x141   : > { %v1662_v22 = vrot.slane %v1647_v19, %v2375_v12 }
 0x142   : > { %v737_v27 = vpop.permute.xlu0 %736 }
 0x143   : > { %v742_v28 = vsel %vm643_vm11, %v737_v27, %v739_v30 }
 0x144   : > { %v746_v8 = vadd.f32 %v742_v28, %v697_v4 }
 0x146   : > { %v786_v17 = vpop.permute.xlu0 %785 }
 0x147   : > { %v791_v63 = vsel %vm643_vm11, %v786_v17, %v788_v26 }
 0x148   : > { %v795_v15 = vadd.f32 %v791_v63, %v746_v8 }
 0x14a   : > { %v860_v45 = vadd.f32 %v856_v60, %v795_v15  ;;  %v900_v31 = vpop.permute.xlu0 %899 }
 0x14b   : > { %v1715_v52 = vpop.permute.xlu1 %1714 }
 0x14c   : > { %v1717_v35 = vmul.f32 %v1715_v52, %v2486_v36  ;;  %v1718_v33 = vmul.f32 %v1715_v52, %v2467_v23  ;;  %v1746_v36 = vrot.slane %v1633_v29, %v2433_v62  ;;  %v1795_v23 = vrot.slane %v1633_v29, %v2444_v7 }
 0x14e   : > { %v1761_v16 = vrot.slane %v1746_v36, %v2433_v62  ;;  %v1810_v60 = vrot.slane %v1795_v23, %v2444_v7 }
 0x14f   : > { %v902_v39 = vpop.permute.xlu1 %901 }
 0x150   : > { %v905_v40 = vsel %vm855_vm12, %v900_v31, %v902_v39 }
 0x151   : > { %v909_v41 = vadd.f32 %v905_v40, %v860_v45 }
 0x153   : > { %v1764_v3 = vpop.permute.xlu1 %1763 }
 0x154   : > { %v1767_v6 = vmul.f32 %v1764_v3, %v2476_v9  ;;  %v1766_v57 = vmul.f32 %v1764_v3, %v2505_v47  ;;  %v1768_v47 = vmul.f32 %v1764_v3, %v1761_v16 }
 0x157   : > { %v1834_v48 = vpop.permute.xlu1 %1833 }
 0x158   : > { %v1835_v58 = vrot.slane %v1834_v48, 4 }
 0x15a   : > { %v1837_v26 = vsel %vm1836_vm13, %v1835_v58, %v1834_v48  ;;  %v2927_v34 = vmul.f32 %v1835_v58, %v1633_v29 }
 0x15b   : > { %v1665_v42 = vpop.permute.xlu0 %1664  ;;  %v2898_v11 = vpop.permute.xlu1 %1874  ;;  %v2914_v32 = vmul.f32 %v1837_v26, %v2417_v54 }
 0x15c   : > { %v1667_v43 = vmul.f32 %v1665_v42, %v2437_v0  ;;  %v1668_v30 = vmul.f32 %v1665_v42, %v2454_v14  ;;  %v1669_v5 = vmul.f32 %v1665_v42, %v1662_v22  ;;  %v1712_v0 = vrot.slane %v1697_v50, %v2378_v13 }
 0x15d   : > { %v1852_v54 = vrot.slane %v2914_v32, %v2420_v56  ;;  %v1848_v21 = vrot.slane %v2914_v32, %v2375_v12  ;;  %v1856_v4 = vrot.slane %v2927_v34, %v2375_v12  ;;  %v1907_v29 = vrot.slane %v2927_v34, %v2378_v13 }
 0x15e   : > { %1675 = vrot.lane.b32.xlu0 %v1668_v30, %s2318_s30  ;;  %1673 = vrot.lane.b32.xlu1 %v1667_v43, %s2318_s30  ;;  %v1719_v14 = vmul.f32 %v1715_v52, %v1712_v0  ;;  %v1948_v30 = vrot.slane %v2914_v32, %v2433_v62  ;;  %v1956_v0 = vrot.slane %v2927_v34, %v2433_v62 }
 0x15f   : > { %v1867_v56 = vrot.slane %v1852_v54, %v2375_v12  ;;  %v1863_v27 = vrot.slane %v1848_v21, %v2375_v12  ;;  %v1871_v31 = vrot.slane %v1856_v4, %v2375_v12  ;;  %v1952_v12 = vrot.slane %v2914_v32, %v2448_v10 }
 0x160   : > { %v1813_v25 = vpop.permute.xlu0 %1812  ;;  %v2904_v53 = vpop.permute.xlu1 %1973  ;;  %v1997_v36 = vrot.slane %v2914_v32, %v2444_v7  ;;  %v1971_v23 = vrot.slane %v1956_v0, %v2433_v62  ;;  %v2001_v21 = vrot.slane %v2914_v32, %v2461_v20 }
 0x161   : > { %v1815_v9 = vmul.f32 %v1813_v25, %v2514_v55  ;;  %v1817_v55 = vmul.f32 %v1813_v25, %v1810_v60  ;;  %v1816_v28 = vmul.f32 %v1813_v25, %v2489_v37  ;;  %v1878_v45 = vmul.f32 %v2898_v11, %v1867_v56 }
 0x162   : > { %1723 = vrot.lane.b32.xlu0 %v1717_v35, %s2318_s30  ;;  %1677 = vrot.lane.b32.xlu1 %v1669_v5, %s2318_s30  ;;  %v1903_v37 = vrot.slane %v2914_v32, %v2430_v61  ;;  %v1879_v43 = vmul.f32 %v2898_v11, %v1871_v31  ;;  %v1922_v5 = vrot.slane %v1907_v29, %v2378_v13 }
 0x163   : > { %v1967_v10 = vrot.slane %v1952_v12, %v2433_v62  ;;  %v2012_v54 = vrot.slane %v1997_v36, %v2444_v7  ;;  %v1978_v60 = vmul.f32 %v2904_v53, %v1971_v23 }
 0x164   : > { %v1918_v50 = vrot.slane %v1903_v37, %v2378_v13 }
 0x165   : > { %v2907_v1 = vpop.permute.xlu0 %1924  ;;  %v2917_v59 = vpop.permute.xlu1 %2022 }
 0x166   : > { %1727 = vrot.lane.b32.xlu0 %v1719_v14, %s2318_s30  ;;  %1725 = vrot.lane.b32.xlu1 %v1718_v33, %s2318_s30  ;;  %v1963_v14 = vrot.slane %v1948_v30, %v2433_v62  ;;  %v1928_v33 = vmul.f32 %v2907_v1, %v1918_v50 }
 0x169   : > { %v904_v2 = vpop.permute.xlu0 %903  ;;  %v949_v24 = vpop.permute.xlu1 %948 }
 0x16a   : > { %v906_v51 = vsel %vm855_vm12, %v902_v39, %v904_v2  ;;  %1774 = vrot.lane.b32.xlu0 %v1767_v6, %s2318_s30  ;;  %1772 = vrot.lane.b32.xlu1 %v1766_v57, %s2318_s30  ;;  %v1877_v39 = vmul.f32 %v2898_v11, %v1863_v27  ;;  %v1929_v11 = vmul.f32 %v2907_v1, %v1922_v5 }
 0x16b   : > { %v910_v18 = vadd.f32 %v906_v51, %v861_v38  ;;  %v1899_v38 = vrot.slane %v2914_v32, %v2378_v13  ;;  %v1977_v2 = vmul.f32 %v2904_v53, %v1967_v10  ;;  %v1976_v51 = vmul.f32 %v2904_v53, %v1963_v14 }
 0x16d   : > { %v951_v49 = vpop.permute.xlu0 %950  ;;  %v953_v8 = vpop.permute.xlu1 %952  ;;  %v1914_v52 = vrot.slane %v1899_v38, %v2378_v13 }
 0x16e   : > { %v954_v44 = vsel %vm855_vm12, %v949_v24, %v951_v49  ;;  %1821 = vrot.lane.b32.xlu0 %v1815_v9, %s2318_s30  ;;  %1776 = vrot.lane.b32.xlu1 %v1768_v47, %s2318_s30  ;;  %v955_v63 = vsel %vm855_vm12, %v951_v49, %v953_v8  ;;  %v2025_v49 = vmul.f32 %v2917_v59, %v2012_v54 }
 0x16f   : > { %v958_v46 = vadd.f32 %v954_v44, %v909_v41  ;;  %v959_v15 = vadd.f32 %v955_v63, %v910_v18  ;;  %v1927_v61 = vmul.f32 %v2907_v1, %v1914_v52  ;;  %v2005_v18 = vrot.slane %v2927_v34, %v2444_v7 }
 0x171   : > { %v998_v17 = vpop.permute.xlu0 %997  ;;  %v1000_v40 = vpop.permute.xlu1 %999 }
 0x172   : > { %1825 = vrot.lane.b32.xlu0 %v1817_v55, %s2318_s30  ;;  %1823 = vrot.lane.b32.xlu1 %v1816_v28, %s2318_s30  ;;  %v1003_v3 = vsel %vm855_vm12, %v998_v17, %v1000_v40  ;;  %v2016_v55 = vrot.slane %v2001_v21, %v2444_v7 }
 0x173   : > { %v1007_v48 = vadd.f32 %v1003_v3, %v958_v46  ;;  %v2020_v46 = vrot.slane %v2005_v18, %v2444_v7 }
 0x174   : > { %v2026_v32 = vmul.f32 %v2917_v59, %v2016_v55 }
 0x175   : > { %v1002_v41 = vpop.permute.xlu0 %1001  ;;  %v1051_v22 = vpop.permute.xlu1 %1050  ;;  %v2027_v20 = vmul.f32 %v2917_v59, %v2020_v46 }
 0x176   : > { %v1004_v19 = vsel %vm855_vm12, %v1000_v40, %v1002_v41  ;;  %1885 = vrot.lane.b32.xlu0 %v1878_v45, %s2319_s6  ;;  %1883 = vrot.lane.b32.xlu1 %v1877_v39, %s2319_s6 }
 0x177   : > { %v1008_v42 = vadd.f32 %v1004_v19, %v959_v15 }
 0x179   : > { %v1053_v35 = vpop.permute.xlu0 %1052  ;;  %v1055_v26 = vpop.permute.xlu1 %1054 }
 0x17a   : > { %v1057_v25 = vsel %vm1056_vm14, %v1051_v22, %v1053_v35  ;;  %1933 = vrot.lane.b32.xlu0 %v1927_v61, %s2319_s6  ;;  %1887 = vrot.lane.b32.xlu1 %v1879_v43, %s2319_s6  ;;  %v1058_v6 = vsel %vm1056_vm14, %v1053_v35, %v1055_v26 }
 0x17b   : > { %v1061_v58 = vadd.f32 %v1057_v25, %v1007_v48  ;;  %v1062_v57 = vadd.f32 %v1058_v6, %v1008_v42 }
 0x17d   : > { %v1101_v13 = vpop.permute.xlu0 %1100  ;;  %v1103_v16 = vpop.permute.xlu1 %1102 }
 0x17e   : > { %1937 = vrot.lane.b32.xlu0 %v1929_v11, %s2319_s6  ;;  %1935 = vrot.lane.b32.xlu1 %v1928_v33, %s2319_s6  ;;  %v1106_v9 = vsel %vm1056_vm14, %v1101_v13, %v1103_v16 }
 0x17f   : > { %v1110_v24 = vadd.f32 %v1106_v9, %v1061_v58 }
 0x181   : > { %v1105_v1 = vpop.permute.xlu0 %1104  ;;  %v1150_v34 = vpop.permute.xlu1 %1149 }
 0x182   : > { %v1107_v47 = vsel %vm1056_vm14, %v1103_v16, %v1105_v1  ;;  %1984 = vrot.lane.b32.xlu0 %v1977_v2, %s2319_s6  ;;  %1982 = vrot.lane.b32.xlu1 %v1976_v51, %s2319_s6 }
 0x183   : > { %v1111_v62 = vadd.f32 %v1107_v47, %v1062_v57 }
 0x185   : > { %v1152_v44 = vpop.permute.xlu0 %1151  ;;  %v1154_v4 = vpop.permute.xlu1 %1153 }
 0x186   : > { %v1155_v56 = vsel %vm1056_vm14, %v1150_v34, %v1152_v44  ;;  %2031 = vrot.lane.b32.xlu0 %v2025_v49, %s2319_s6  ;;  %1986 = vrot.lane.b32.xlu1 %v1978_v60, %s2319_s6  ;;  %v1156_v53 = vsel %vm1056_vm14, %v1152_v44, %v1154_v4 }
 0x187   : > { %v1159_v38 = vadd.f32 %v1155_v56, %v1110_v24  ;;  %v1160_v28 = vadd.f32 %v1156_v53, %v1111_v62 }
 0x189   : > { %v1199_v27 = vpop.permute.xlu0 %1198  ;;  %v1201_v8 = vpop.permute.xlu1 %1200 }
 0x18a   : > { %2035 = vrot.lane.b32.xlu0 %v2027_v20, %s2319_s6  ;;  %2033 = vrot.lane.b32.xlu1 %v2026_v32, %s2319_s6  ;;  %v1204_v7 = vsel %vm1056_vm14, %v1199_v27, %v1201_v8 }
 0x18b   : > { %v1208_v15 = vadd.f32 %v1204_v7, %v1159_v38 }
 0x18d   : > { %v1203_v17 = vpop.permute.xlu0 %1202  ;;  %v1261_v52 = vpop.permute.xlu1 %1260 }
 0x18e   : > { %v1205_v63 = vsel %vm1056_vm14, %v1201_v8, %v1203_v17 }
 0x18f   : > { %v1209_v45 = vadd.f32 %v1205_v63, %v1160_v28 }
 0x191   : > { %v1263_v31 = vpop.permute.xlu0 %1262  ;;  %v1265_v59 = vpop.permute.xlu1 %1264 }
 0x192   : > { %v1267_v2 = vsel %vm1266_vm15, %v1261_v52, %v1263_v31  ;;  %v1268_v23 = vsel %vm1266_vm15, %v1263_v31, %v1265_v59 }
 0x193   : > { %v1271_v18 = vadd.f32 %v1267_v2, %v1208_v15  ;;  %v1272_v54 = vadd.f32 %v1268_v23, %v1209_v45 }
 0x195   : > { %v1311_v39 = vpop.permute.xlu0 %1310  ;;  %v1313_v37 = vpop.permute.xlu1 %1312 }
 0x196   : > { %v1316_v51 = vsel %vm1266_vm15, %v1311_v39, %v1313_v37 }
 0x197   : > { %v1320_v24 = vadd.f32 %v1316_v51, %v1271_v18 }
 0x199   : > { %v1315_v40 = vpop.permute.xlu0 %1314  ;;  %v1360_v41 = vpop.permute.xlu1 %1359 }
 0x19a   : > { %v1317_v16 = vsel %vm1266_vm15, %v1313_v37, %v1315_v40 }
 0x19b   : > { %v1321_v62 = vadd.f32 %v1317_v16, %v1272_v54 }
 0x19d   : > { %v1362_v29 = vpop.permute.xlu0 %1361  ;;  %v1364_v3 = vpop.permute.xlu1 %1363 }
 0x19e   : > { %v1365_v47 = vsel %vm1266_vm15, %v1360_v41, %v1362_v29  ;;  %v1366_v21 = vsel %vm1266_vm15, %v1362_v29, %v1364_v3 }
 0x19f   : > { %v1369_v44 = vadd.f32 %v1365_v47, %v1320_v24  ;;  %v1370_v46 = vadd.f32 %v1366_v21, %v1321_v62 }
 0x1a1   : > { %v1409_v19 = vpop.permute.xlu0 %1408  ;;  %v1411_v48 = vpop.permute.xlu1 %1410 }
 0x1a2   : > { %v1414_v49 = vsel %vm1266_vm15, %v1409_v19, %v1411_v48 }
 0x1a3   : > { %v1418_v20 = vadd.f32 %v1414_v49, %v1369_v44 }
 0x1a5   : > { %v1413_v42 = vpop.permute.xlu0 %1412  ;;  %v1473_v12 = vpop.permute.xlu1 %1472 }
 0x1a6   : > { %v1415_v60 = vsel %vm1266_vm15, %v1411_v48, %v1413_v42 }
 0x1a7   : > { %v1419_v32 = vadd.f32 %v1415_v60, %v1370_v46 }
 0x1a9   : > { %v1475_v61 = vpop.permute.xlu0 %1474  ;;  %v1477_v43 = vpop.permute.xlu1 %1476 }
 0x1aa   : > { %v1479_v55 = vsel %vm1478_vm0, %v1473_v12, %v1475_v61  ;;  %v1480_v38 = vsel %vm1478_vm0, %v1475_v61, %v1477_v43 }
 0x1ab   : > { %v1483_v28 = vadd.f32 %v1479_v55, %v1418_v20  ;;  %v1484_v8 = vadd.f32 %v1480_v38, %v1419_v32 }
 0x1ad   : > { %v1523_v30 = vpop.permute.xlu0 %1522  ;;  %v1525_v50 = vpop.permute.xlu1 %1524 }
 0x1ae   : > { %v1528_v4 = vsel %vm1478_vm0, %v1523_v30, %v1525_v50 }
 0x1af   : > { %v1532_v15 = vadd.f32 %v1528_v4, %v1483_v28 }
 0x1b1   : > { %v1527_v22 = vpop.permute.xlu0 %1526  ;;  %v1572_v35 = vpop.permute.xlu1 %1571 }
 0x1b2   : > { %v1529_v27 = vsel %vm1478_vm0, %v1525_v50, %v1527_v22 }
 0x1b3   : > { %v1533_v45 = vadd.f32 %v1529_v27, %v1484_v8 }
 0x1b5   : > { %v1574_v5 = vpop.permute.xlu0 %1573  ;;  %v1576_v25 = vpop.permute.xlu1 %1575 }
 0x1b6   : > { %v1577_v7 = vsel %vm1478_vm0, %v1572_v35, %v1574_v5  ;;  %v1578_v63 = vsel %vm1478_vm0, %v1574_v5, %v1576_v25 }
 0x1b7   : > { %v1581_v39 = vadd.f32 %v1577_v7, %v1532_v15  ;;  %v1582_v37 = vadd.f32 %v1578_v63, %v1533_v45 }
 0x1b9   : > { %v1621_v58 = vpop.permute.xlu0 %1620  ;;  %v1623_v10 = vpop.permute.xlu1 %1622 }
 0x1ba   : > { %v1626_v52 = vsel %vm1478_vm0, %v1621_v58, %v1623_v10 }
 0x1bb   : > { %v1630_v3 = vadd.f32 %v1626_v52, %v1581_v39 }
 0x1bd   : > { %v1625_v11 = vpop.permute.xlu0 %1624 }
 0x1be   : > { %v1627_v31 = vsel %vm1478_vm0, %v1623_v10, %v1625_v11 }
 0x1bf   : > { %v1631_v19 = vadd.f32 %v1627_v31, %v1582_v37 }
 0x1d0   : > { %v1674_v0 = vpop.permute.xlu1 %1673  ;;  %v1676_v14 = vpop.permute.xlu0 %1675 }
 0x1d1   : > { %v1680_v41 = vsel %vm1679_vm1, %v1674_v0, %v1676_v14 }
 0x1d2   : > { %v1684_v61 = vadd.f32 %v1680_v41, %v1630_v3 }
 0x1d4   : > { %v1678_v33 = vpop.permute.xlu1 %1677  ;;  %v1724_v26 = vpop.permute.xlu0 %1723 }
 0x1d5   : > { %v1681_v29 = vsel %vm1679_vm1, %v1676_v14, %v1678_v33 }
 0x1d6   : > { %v1685_v43 = vadd.f32 %v1681_v29, %v1631_v19 }
 0x1d8   : > { %v1728_v13 = vpop.permute.xlu0 %1727  ;;  %v1726_v36 = vpop.permute.xlu1 %1725 }
 0x1d9   : > { %v1729_v48 = vsel %vm1679_vm1, %v1724_v26, %v1726_v36  ;;  %v1730_v42 = vsel %vm1679_vm1, %v1726_v36, %v1728_v13 }
 0x1da   : > { %v1733_v35 = vadd.f32 %v1729_v48, %v1684_v61  ;;  %v1734_v5 = vadd.f32 %v1730_v42, %v1685_v43 }
 0x1dc   : > { %v1775_v6 = vpop.permute.xlu0 %1774  ;;  %v1773_v57 = vpop.permute.xlu1 %1772 }
 0x1dd   : > { %v1778_v50 = vsel %vm1679_vm1, %v1773_v57, %v1775_v6 }
 0x1de   : > { %v1782_v11 = vadd.f32 %v1778_v50, %v1733_v35 }
 0x1e0   : > { %v1822_v1 = vpop.permute.xlu0 %1821  ;;  %v1777_v9 = vpop.permute.xlu1 %1776 }
 0x1e1   : > { %v1779_v22 = vsel %vm1679_vm1, %v1775_v6, %v1777_v9 }
 0x1e2   : > { %v1783_v0 = vadd.f32 %v1779_v22, %v1734_v5 }
 0x1e4   : > { %v1826_v34 = vpop.permute.xlu0 %1825  ;;  %v1824_v56 = vpop.permute.xlu1 %1823 }
 0x1e5   : > { %v1827_v25 = vsel %vm1679_vm1, %v1822_v1, %v1824_v56  ;;  %v1828_v58 = vsel %vm1679_vm1, %v1824_v56, %v1826_v34 }
 0x1e6   : > { %v1831_v13 = vadd.f32 %v1827_v25, %v1782_v11  ;;  %v1832_v36 = vadd.f32 %v1828_v58, %v1783_v0 }
 0x1e8   : > { %v1886_v53 = vpop.permute.xlu0 %1885  ;;  %v1884_v17 = vpop.permute.xlu1 %1883 }
 0x1e9   : > { %v1890_v33 = vsel %vm1889_vm2, %v1884_v17, %v1886_v53 }
 0x1ea   : > { %v1894_v23 = vadd.f32 %v1890_v33, %v1831_v13 }
 0x1ec   : > { %v1934_v59 = vpop.permute.xlu0 %1933  ;;  %v1888_v40 = vpop.permute.xlu1 %1887 }
 0x1ed   : > { %v1891_v26 = vsel %vm1889_vm2, %v1886_v53, %v1888_v40 }
 0x1ee   : > { %v1895_v51 = vadd.f32 %v1891_v26, %v1832_v36 }
 0x1f0   : > { %v1938_v12 = vpop.permute.xlu0 %1937  ;;  %v1936_v30 = vpop.permute.xlu1 %1935 }
 0x1f1   : > { %v1939_v57 = vsel %vm1889_vm2, %v1934_v59, %v1936_v30  ;;  %v1940_v6 = vsel %vm1889_vm2, %v1936_v30, %v1938_v12 }
 0x1f2   : > { %v1943_v54 = vadd.f32 %v1939_v57, %v1894_v23  ;;  %v1944_v9 = vadd.f32 %v1940_v6, %v1895_v51 }
 0x1f4   : > { %v1985_v10 = vpop.permute.xlu0 %1984  ;;  %v1983_v14 = vpop.permute.xlu1 %1982 }
 0x1f5   : > { %v1988_v1 = vsel %vm1889_vm2, %v1983_v14, %v1985_v10 }
 0x1f6   : > { %v1992_v21 = vadd.f32 %v1988_v1, %v1943_v54 }
 0x1f8   : > { %v2032_v2 = vpop.permute.xlu0 %2031  ;;  %v1987_v16 = vpop.permute.xlu1 %1986 }
 0x1f9   : > { %v1989_v18 = vsel %vm1889_vm2, %v1985_v10, %v1987_v16 }
 0x1fa   : > { %v1993_v24 = vadd.f32 %v1989_v18, %v1944_v9 }
 0x1fc   : > { %v2036_v47 = vpop.permute.xlu0 %2035  ;;  %v2034_v62 = vpop.permute.xlu1 %2033 }
 0x1fd   : > { %v2037_v49 = vsel %vm1889_vm2, %v2032_v2, %v2034_v62  ;;  %v2038_v60 = vsel %vm1889_vm2, %v2034_v62, %v2036_v47 }
 0x1fe   : > { %v2041_v34 = vadd.f32 %v2037_v49, %v1992_v21  ;;  %v2042_v44 = vadd.f32 %v2038_v60, %v1993_v24 }
 0x200   : > { %v2045_v46 = vcombine.low %v2041_v34, %v2042_v44  ;;  %v2049_v56 = vsel %vm2048_vm3, %v2041_v34, 0.0  ;;  %v2050_v55 = vsel %vm2048_vm3, %v2042_v44, 0.0  ;;  %v2056_v38 = vmul.f32 %v2041_v34, %v2041_v34 }
 0x201   : > { %v2051_v20 = vadd.f32 %v2050_v55, %v2049_v56  ;;  %v2057_v32 = vmul.f32 %v2042_v44, %v2042_v44 }
 0x202   : > { %2047 = vst [vmem:[%s231_s9] sm:$0xff] %v2045_v46  ;;  %v2058_v4 = vsel %vm2048_vm3, %v2056_v38, 0.0 }
 0x203   : > { %2052 = vadd.xlane.f32.xlu1 %v2051_v20  ;;  %v2059_v27 = vsel %vm2048_vm3, %v2057_v32, 0.0 }
 0x204   : > { %v2060_v53 = vadd.f32 %v2059_v27, %v2058_v4 }
 0x206   : > { %2061 = vadd.xlane.f32.xlu0 %v2060_v53 }
 0x290   : > { %v2053_v28 = vpop.xlane.xlu1 %2052 }
 0x291   : > { %2055 = vst.msk [vmem:[%s235_s13] sm:$0xf] %vm2054_vm4, %v2053_v28 }
 0x293   : > { %v2062_v8 = vpop.xlane.xlu0 %2061 }
 0x294   : > { %2064 = vst.msk [vmem:[%s235_s13] sm:$0xf] %vm2063_vm5, %v2062_v8 }
 0x295 PF: > { %s16_s18 = sadd.s32 1, %s2267_s18  }
 0x296   : > { %p13_p4 = scmp.ge.s32.totalorder %s16_s18, 4  }
 0x298   :  { %15 = sbr.rel (!%p13_p4) target bundleno = 1 (0x1), region = 78 }

</bundles_post_ra>
